<compile_context>
chip_gen: v7x
topology: tpu7x:2x2x1
jax: 0.10.0
libtpu: 0.0.40
codegen_flags: <defaults>
</compile_context>

<pallas_src>
import math

import jax
import jax.numpy as jnp
from jax.experimental import pallas as pl
from jax.experimental.pallas import tpu as pltpu

# ---- small synthetic "ru_bert"-style config (real checkpoint: H=768, 12 layers/heads, S<=512) ----
VOCAB = 64
B, S = 2, 8
HIDDEN = 32
NUM_HEADS = 4
HEAD_DIM = HIDDEN // NUM_HEADS
INTERMEDIATE = 64
NUM_LAYERS = 2
NUM_LABELS = 18
LABELS_PAD = 128          # lane-dense classifier output; real logits sliced outside the kernel
LN_EPS = 1e-12
BN_EPS = 1e-5
BATCH_BLOCK = 8           # TB: examples per grid step (amortizes per-layer weight streaming)


# --------------------------------------------------------------------------------------
# In-kernel helpers
# --------------------------------------------------------------------------------------
def _layernorm(x, g, b, eps):
    mu = jnp.mean(x, axis=-1, keepdims=True)
    var = jnp.mean((x - mu) ** 2, axis=-1, keepdims=True)
    return (x - mu) * jax.lax.rsqrt(var + eps) * g + b


def _gelu_tanh(x):
    # tanh-GELU: tanh lowers to the EUP slot (VALU stays free); matches erf-GELU to ~1e-3.
    return 0.5 * x * (1.0 + jnp.tanh(0.7978845608028654 * (x + 0.044715 * x * x * x)))


# --------------------------------------------------------------------------------------
# Fused forward kernel: (pre-LN'd) embeddings -> L encoder layers -> masked mean pool -> head
# --------------------------------------------------------------------------------------
def fused_forward_kernel(
        emb_ref, mask_ref,                        # batch-blocked activations / mask
        wqkv_ref, bqkv_ref, wo_ref, bo_ref,       # attention (current layer)
        ln1_g_ref, ln1_b_ref,
        wi_ref, bi_ref, wo2_ref, bo2_ref,         # FFN (current layer)
        ln2_g_ref, ln2_b_ref,
        bn_g_ref, bn_b_ref, bn_m_ref, bn_v_ref,   # classifier head
        w_cls_ref, b_cls_ref,
        out_ref,                                  # (TB, LABELS_PAD) lane-dense logits
        x_scr):                                   # (TB*S, H) f32 activation, resident across layers
    layer = pl.program_id(1)
    tb, s, h = emb_ref.shape
    ts = tb * s
    nh = NUM_HEADS
    hd = h // nh
    g = nh * tb                                   # merged (head, batch) axis for batched einsums

    # First layer-step of this batch block: embeddings (LayerNorm pre-applied in glue) -> scratch.
    @pl.when(layer == 0)
    def _():
        x_scr[...] = emb_ref[...].reshape(ts, h)

    x = x_scr[...]                                # (TB*S, H) f32 residual stream
    mask = mask_ref[...]                          # (TB, 1, S) f32, 1 = valid token
    neg = (1.0 - mask) * -10000.0                 # additive attention mask
    neg_g = jnp.tile(neg, (nh, 1, 1))             # (NH*TB, 1, S); index g = head*TB + b
    xb = x.astype(jnp.bfloat16)

    # ---- self-attention: one fused QKV matmul; weight columns are head-interleaved
    # ([q_h|k_h|v_h] per head) so the head split is NH coarse bf16 lane-slices. ----
    qkv = (jnp.dot(xb, wqkv_ref[...], preferred_element_type=jnp.float32)
           + bqkv_ref[...]).astype(jnp.bfloat16)                    # (TS, NH*3*HD)
    per_head = jnp.stack(
        [qkv[:, i * 3 * hd:(i + 1) * 3 * hd] for i in range(nh)], axis=0)   # (NH, TS, 3*HD)
    # 1/sqrt(HEAD_DIM) is folded into Wq (and bq) at init time.
    q = per_head[:, :, 0 * hd:1 * hd].reshape(g, s, hd)             # (G, S, HD)
    k = per_head[:, :, 1 * hd:2 * hd].reshape(g, s, hd)
    v = per_head[:, :, 2 * hd:3 * hd].reshape(g, s, hd)

    sc = jnp.einsum('gqd,gkd->gqk', q, k, preferred_element_type=jnp.float32) + neg_g
    sc = sc - jnp.max(sc, axis=-1, keepdims=True)
    p = jnp.exp(sc)
    p = p * pl.reciprocal(jnp.sum(p, axis=-1, keepdims=True), approx=True)
    ctx = jnp.einsum('gqk,gkd->gqd', p.astype(jnp.bfloat16), v,
                     preferred_element_type=jnp.float32).astype(jnp.bfloat16)   # (G, S, HD)
    # TODO(synk): KV-tile the softmax (flash-style) for real S=512 to bound the (G,S,S) live set.

    # Output projection: fold heads back into the lane axis (cheap per-head concat, bf16) and do
    # ONE MXU dot contracting over all of H = NH*HD -- no (NH, S, H) f32 pre-sum intermediate.
    ctx_tok = jnp.concatenate(
        [ctx[i * tb:(i + 1) * tb].reshape(ts, hd) for i in range(nh)], axis=-1)  # (TS, H) bf16
    attn = jnp.dot(ctx_tok, wo_ref[...], preferred_element_type=jnp.float32) + bo_ref[...]
    x1 = _layernorm(x + attn, ln1_g_ref[...], ln1_b_ref[...], LN_EPS)

    # ---- FFN (tanh-GELU) ----
    hid = jnp.dot(x1.astype(jnp.bfloat16), wi_ref[...],
                  preferred_element_type=jnp.float32) + bi_ref[...]
    hid = _gelu_tanh(hid)
    ffn = jnp.dot(hid.astype(jnp.bfloat16), wo2_ref[...],
                  preferred_element_type=jnp.float32) + bo2_ref[...]
    x_out = _layernorm(x1 + ffn, ln2_g_ref[...], ln2_b_ref[...], LN_EPS)
    x_scr[...] = x_out

    # Last layer-step: masked mean pool + BatchNorm1d(eval) + Dropout(identity) + ReLU + Linear.
    @pl.when(layer == pl.num_programs(1) - 1)
    def _():
        x3 = x_out.reshape(tb, s, h)
        m = mask[:, 0, :]                                               # (TB, S)
        summed = jnp.sum(x3 * m[:, :, None], axis=1)                    # (TB, H)
        denom = jnp.maximum(jnp.sum(m, axis=-1, keepdims=True), 1e-9)   # (TB, 1)
        pooled = summed * pl.reciprocal(denom, approx=True)
        xn = ((pooled - bn_m_ref[...]) * jax.lax.rsqrt(bn_v_ref[...] + BN_EPS)
              * bn_g_ref[...] + bn_b_ref[...])
        xr = jnp.maximum(xn, 0.0)                                       # Dropout(p=0.6) = identity in eval
        out_ref[...] = (jnp.dot(xr.astype(jnp.bfloat16), w_cls_ref[...],
                                preferred_element_type=jnp.float32) + b_cls_ref[...])


# --------------------------------------------------------------------------------------
# Wrapper
# --------------------------------------------------------------------------------------
def _layer_spec(*tail):
    return pl.BlockSpec((None,) + tail, lambda b, l: (l,) + (0,) * len(tail))


def _const_spec(*shape):
    return pl.BlockSpec(shape, lambda b, l: (0,) * len(shape))


def category_classifier_forward(params, input_ids, attention_mask, *, batch_block=BATCH_BLOCK):
    bsz, seq = input_ids.shape
    hidden = params['word_emb'].shape[1]
    tb = min(batch_block, bsz)
    bpad = pl.cdiv(bsz, tb) * tb

    # Glue (plain JAX): embedding-table gather + embedding LayerNorm (consumed once, at layer 0,
    # so it is NOT kept as raw data resident across the in-kernel layer loop).
    emb = (params['word_emb'][input_ids]
           + params['pos_emb'][:seq][None, :, :]
           + params['type_emb'][0][None, None, :]).astype(jnp.float32)          # (B, S, H)
    mu = jnp.mean(emb, axis=-1, keepdims=True)
    var = jnp.mean((emb - mu) ** 2, axis=-1, keepdims=True)
    emb = (emb - mu) * jax.lax.rsqrt(var + LN_EPS) * params['emb_ln_g'] + params['emb_ln_b']
    mask3 = attention_mask.astype(jnp.float32)[:, None, :]                      # (B, 1, S)

    if bpad != bsz:   # pad batch to a multiple of the batch block (padded rows carry mask = 0)
        emb = jnp.pad(emb, ((0, bpad - bsz), (0, 0), (0, 0)))
        mask3 = jnp.pad(mask3, ((0, bpad - bsz), (0, 0), (0, 0)))

    # Per-generation VMEM budget: ~85% of physical (v5e/v6e: 128 MiB, v7x: 64 MiB), capped 96 MiB.
    try:
        vmem_cap = pltpu.get_tpu_info().vmem_capacity_bytes
    except Exception:
        vmem_cap = 64 * 1024 * 1024
    vmem_limit = min(int(vmem_cap * 0.85), 96 * 1024 * 1024)

    in_specs = [
        pl.BlockSpec((tb, seq, hidden), lambda b, l: (b, 0, 0)),          # embeddings (batch-blocked)
        pl.BlockSpec((tb, 1, seq), lambda b, l: (b, 0, 0)),               # attention mask
        _layer_spec(hidden, 3 * hidden), _layer_spec(1, 3 * hidden),      # fused QKV (head-interleaved)
        _layer_spec(hidden, hidden), _layer_spec(1, hidden),              # attention out projection
        _layer_spec(1, hidden), _layer_spec(1, hidden),                   # LN1
        _layer_spec(hidden, INTERMEDIATE), _layer_spec(1, INTERMEDIATE),  # FFN in
        _layer_spec(INTERMEDIATE, hidden), _layer_spec(1, hidden),        # FFN out
        # TODO(synk): K-tile wi/wo2 over INTERMEDIATE (extra grid axis) if real shapes overflow v7x VMEM.
        _layer_spec(1, hidden), _layer_spec(1, hidden),                   # LN2
        _const_spec(1, hidden), _const_spec(1, hidden),                   # BN gamma/beta
        _const_spec(1, hidden), _const_spec(1, hidden),                   # BN mean/var
        _const_spec(hidden, LABELS_PAD), _const_spec(1, LABELS_PAD),      # classifier (lane-dense)
    ]
    out_spec = pl.BlockSpec((tb, LABELS_PAD), lambda b, l: (b, 0))

    logits_pad = pl.pallas_call(
        fused_forward_kernel,
        out_shape=jax.ShapeDtypeStruct((bpad, LABELS_PAD), jnp.float32),
        grid_spec=pltpu.PrefetchScalarGridSpec(
            num_scalar_prefetch=0,
            grid=(bpad // tb, NUM_LAYERS),
            in_specs=in_specs,
            out_specs=out_spec,
            scratch_shapes=[pltpu.VMEM((tb * seq, hidden), jnp.float32)],
        ),
        compiler_params=pltpu.CompilerParams(
            # batch-BLOCK axis across TensorCores on v7x (no-op on 1-TC v5e/v6e); layer axis serial
            dimension_semantics=("parallel", "arbitrary"),
            vmem_limit_bytes=vmem_limit,
        ),
    )(emb, mask3,
      params['w_qkv'], params['b_qkv'], params['wo'], params['bo'],
      params['ln1_g'], params['ln1_b'],
      params['wi'], params['bi'], params['wo2'], params['bo2'],
      params['ln2_g'], params['ln2_b'],
      params['bn_g'], params['bn_b'], params['bn_m'], params['bn_v'],
      params['w_cls'], params['b_cls'])

    return logits_pad[:bsz, :NUM_LABELS]


def init_params(key):
    keys = iter(jax.random.split(key, 32))

    def nrm(shape, scale=0.02):
        return (scale * jax.random.normal(next(keys), shape)).astype(jnp.float32)

    inv_sqrt_d = 1.0 / math.sqrt(HEAD_DIM)
    # Fold the attention 1/sqrt(head_dim) scale into Wq AND bq (a real checkpoint's query bias
    # must be scaled identically).
    wq = nrm((NUM_LAYERS, HIDDEN, HIDDEN)) * inv_sqrt_d
    bq = jnp.zeros((NUM_LAYERS, 1, HIDDEN), jnp.float32) * inv_sqrt_d
    wk = nrm((NUM_LAYERS, HIDDEN, HIDDEN))
    bk = jnp.zeros((NUM_LAYERS, 1, HIDDEN), jnp.float32)
    wv = nrm((NUM_LAYERS, HIDDEN, HIDDEN))
    bv = jnp.zeros((NUM_LAYERS, 1, HIDDEN), jnp.float32)
    wo = nrm((NUM_LAYERS, HIDDEN, HIDDEN))

    def interleave_heads(q, k, v, rows):
        # columns (h, d) -> columns (h, {q|k|v}, d): one lane-slice of width 3*HD per head in-kernel
        qh = q.reshape(NUM_LAYERS, rows, NUM_HEADS, HEAD_DIM)
        kh = k.reshape(NUM_LAYERS, rows, NUM_HEADS, HEAD_DIM)
        vh = v.reshape(NUM_LAYERS, rows, NUM_HEADS, HEAD_DIM)
        return jnp.stack([qh, kh, vh], axis=3).reshape(NUM_LAYERS, rows, 3 * HIDDEN)

    w_cls = nrm((HIDDEN, NUM_LABELS))
    w_cls_pad = jnp.zeros((HIDDEN, LABELS_PAD), jnp.float32).at[:, :NUM_LABELS].set(w_cls)

    params = dict(
        word_emb=nrm((VOCAB, HIDDEN)),
        pos_emb=nrm((S, HIDDEN)),
        type_emb=nrm((2, HIDDEN)),
        emb_ln_g=jnp.ones((1, HIDDEN), jnp.float32),
        emb_ln_b=jnp.zeros((1, HIDDEN), jnp.float32),
        # layer-stacked weights: bf16 matmul inputs (f32 accumulation in-kernel), f32 biases/LN
        w_qkv=interleave_heads(wq, wk, wv, HIDDEN).astype(jnp.bfloat16),   # (L, H, 3H) head-interleaved
        b_qkv=interleave_heads(bq, bk, bv, 1),                             # (L, 1, 3H)
        wo=wo.astype(jnp.bfloat16),                                        # (L, H, H), rows ordered (h, d)
        bo=jnp.zeros((NUM_LAYERS, 1, HIDDEN), jnp.float32),
        ln1_g=jnp.ones((NUM_LAYERS, 1, HIDDEN), jnp.float32),
        ln1_b=jnp.zeros((NUM_LAYERS, 1, HIDDEN), jnp.float32),
        wi=nrm((NUM_LAYERS, HIDDEN, INTERMEDIATE)).astype(jnp.bfloat16),
        bi=jnp.zeros((NUM_LAYERS, 1, INTERMEDIATE), jnp.float32),
        wo2=nrm((NUM_LAYERS, INTERMEDIATE, HIDDEN)).astype(jnp.bfloat16),
        bo2=jnp.zeros((NUM_LAYERS, 1, HIDDEN), jnp.float32),
        ln2_g=jnp.ones((NUM_LAYERS, 1, HIDDEN), jnp.float32),
        ln2_b=jnp.zeros((NUM_LAYERS, 1, HIDDEN), jnp.float32),
        bn_g=1.0 + nrm((1, HIDDEN), 0.1),
        bn_b=nrm((1, HIDDEN), 0.1),
        bn_m=nrm((1, HIDDEN), 0.1),
        bn_v=1.0 + jnp.abs(nrm((1, HIDDEN), 0.1)),
        w_cls=w_cls_pad.astype(jnp.bfloat16),                              # (H, 128) lane-dense
        b_cls=jnp.zeros((1, LABELS_PAD), jnp.float32),
    )
    return params


if __name__ == "__main__":
    key = jax.random.PRNGKey(0)
    pkey, ikey = jax.random.split(key, 2)
    params = init_params(pkey)

    input_ids = jax.random.randint(ikey, (B, S), 0, VOCAB, dtype=jnp.int32)
    attention_mask = jnp.concatenate(
        [jnp.ones((B, S - 2), jnp.int32), jnp.zeros((B, 2), jnp.int32)], axis=1)

    logits = category_classifier_forward(params, input_ids, attention_mask)
    logits = jax.block_until_ready(logits)
    assert logits.shape == (B, NUM_LABELS) and logits.dtype == jnp.float32
    print("KERNEL_OK")
</pallas_src>

<mosaic_0001>
module attributes {stable_mosaic.version = 11 : i64} {
  func.func @fused_forward_kernel(%arg0: i32, %arg1: i32, %arg2: memref<2x8x32xf32, #tpu.memory_space<vmem>>, %arg3: memref<2x1x8xf32, #tpu.memory_space<vmem>>, %arg4: memref<1x32x96xbf16, #tpu.memory_space<vmem>>, %arg5: memref<1x1x96xf32, #tpu.memory_space<vmem>>, %arg6: memref<1x32x32xbf16, #tpu.memory_space<vmem>>, %arg7: memref<1x1x32xf32, #tpu.memory_space<vmem>>, %arg8: memref<1x1x32xf32, #tpu.memory_space<vmem>>, %arg9: memref<1x1x32xf32, #tpu.memory_space<vmem>>, %arg10: memref<1x32x64xbf16, #tpu.memory_space<vmem>>, %arg11: memref<1x1x64xf32, #tpu.memory_space<vmem>>, %arg12: memref<1x64x32xbf16, #tpu.memory_space<vmem>>, %arg13: memref<1x1x32xf32, #tpu.memory_space<vmem>>, %arg14: memref<1x1x32xf32, #tpu.memory_space<vmem>>, %arg15: memref<1x1x32xf32, #tpu.memory_space<vmem>>, %arg16: memref<1x32xf32, #tpu.memory_space<vmem>>, %arg17: memref<1x32xf32, #tpu.memory_space<vmem>>, %arg18: memref<1x32xf32, #tpu.memory_space<vmem>>, %arg19: memref<1x32xf32, #tpu.memory_space<vmem>>, %arg20: memref<32x128xbf16, #tpu.memory_space<vmem>>, %arg21: memref<1x128xf32, #tpu.memory_space<vmem>>, %arg22: memref<2x128xf32, #tpu.memory_space<vmem>>, %arg23: memref<16x32xf32, #tpu.memory_space<vmem>>) attributes {dimension_semantics = [#tpu.dimension_semantics<parallel>, #tpu.dimension_semantics<arbitrary>], iteration_bounds = array<i64: 1, 2>, scalar_prefetch = 0 : i64, scratch_operands = 1 : i64, tpu.core_type = #tpu.core_type<tc>, window_params = [{transform_indices = @transform_0, window_bounds = array<i64: 2, 8, 32>}, {transform_indices = @transform_1, window_bounds = array<i64: 2, 1, 8>}, {transform_indices = @transform_2, window_bounds = array<i64: 1, 32, 96>}, {transform_indices = @transform_3, window_bounds = array<i64: 1, 1, 96>}, {transform_indices = @transform_4, window_bounds = array<i64: 1, 32, 32>}, {transform_indices = @transform_5, window_bounds = array<i64: 1, 1, 32>}, {transform_indices = @transform_6, window_bounds = array<i64: 1, 1, 32>}, {transform_indices = @transform_7, window_bounds = array<i64: 1, 1, 32>}, {transform_indices = @transform_8, window_bounds = array<i64: 1, 32, 64>}, {transform_indices = @transform_9, window_bounds = array<i64: 1, 1, 64>}, {transform_indices = @transform_10, window_bounds = array<i64: 1, 64, 32>}, {transform_indices = @transform_11, window_bounds = array<i64: 1, 1, 32>}, {transform_indices = @transform_12, window_bounds = array<i64: 1, 1, 32>}, {transform_indices = @transform_13, window_bounds = array<i64: 1, 1, 32>}, {pipeline_mode = #tpu.pipeline_mode<synchronous>, transform_indices = @transform_14, window_bounds = array<i64: 1, 32>}, {pipeline_mode = #tpu.pipeline_mode<synchronous>, transform_indices = @transform_15, window_bounds = array<i64: 1, 32>}, {pipeline_mode = #tpu.pipeline_mode<synchronous>, transform_indices = @transform_16, window_bounds = array<i64: 1, 32>}, {pipeline_mode = #tpu.pipeline_mode<synchronous>, transform_indices = @transform_17, window_bounds = array<i64: 1, 32>}, {pipeline_mode = #tpu.pipeline_mode<synchronous>, transform_indices = @transform_18, window_bounds = array<i64: 32, 128>}, {pipeline_mode = #tpu.pipeline_mode<synchronous>, transform_indices = @transform_19, window_bounds = array<i64: 1, 128>}, {transform_indices = @transform_20, window_bounds = array<i64: 2, 128>}]} {
    %c0_i32 = arith.constant 0 : i32
    %0 = arith.cmpi eq, %arg1, %c0_i32 : i32
    %1 = arith.extui %0 : i1 to i32
    %c0_i32_0 = arith.constant 0 : i32
    %2 = arith.cmpi ne, %1, %c0_i32_0 : i32
    scf.if %2 {
      %c0_67 = arith.constant 0 : index
      %c0_68 = arith.constant 0 : index
      %c0_69 = arith.constant 0 : index
      %153 = vector.load %arg2[%c0_67, %c0_68, %c0_69] : memref<2x8x32xf32, #tpu.memory_space<vmem>>, vector<2x8x32xf32>
      %154 = vector.shape_cast %153 : vector<2x8x32xf32> to vector<16x32xf32>
      %c0_70 = arith.constant 0 : index
      %c0_71 = arith.constant 0 : index
      %155 = vector.load %arg23[%c0_70, %c0_71] : memref<16x32xf32, #tpu.memory_space<vmem>>, vector<16x32xf32>
      tpu.vector_store %arg23[%c0_70, %c0_71], %154 {strides = array<i32>} : memref<16x32xf32, #tpu.memory_space<vmem>>, vector<16x32xf32>,
    } else {
    }
    %c0 = arith.constant 0 : index
    %c0_1 = arith.constant 0 : index
    %3 = vector.load %arg23[%c0, %c0_1] : memref<16x32xf32, #tpu.memory_space<vmem>>, vector<16x32xf32>
    %c0_2 = arith.constant 0 : index
    %c0_3 = arith.constant 0 : index
    %c0_4 = arith.constant 0 : index
    %4 = vector.load %arg3[%c0_2, %c0_3, %c0_4] : memref<2x1x8xf32, #tpu.memory_space<vmem>>, vector<2x1x8xf32>
    %cst = arith.constant 1.000000e+00 : f32
    %5 = vector.broadcast %cst : f32 to vector<2x1x8xf32>
    %6 = arith.subf %5, %4 : vector<2x1x8xf32>
    %cst_5 = arith.constant -1.000000e+04 : f32
    %7 = vector.broadcast %cst_5 : f32 to vector<2x1x8xf32>
    %8 = arith.mulf %6, %7 : vector<2x1x8xf32>
    %9 = tpu.concatenate %8, %8, %8, %8 in 0 : vector<2x1x8xf32>, vector<2x1x8xf32>, vector<2x1x8xf32>, vector<2x1x8xf32> -> vector<8x1x8xf32>
    %10 = arith.truncf %3 : vector<16x32xf32> to vector<16x32xbf16>
    %c0_6 = arith.constant 0 : index
    %c0_7 = arith.constant 0 : index
    %c0_8 = arith.constant 0 : index
    %11 = vector.load %arg4[%c0_6, %c0_7, %c0_8] : memref<1x32x96xbf16, #tpu.memory_space<vmem>>, vector<1x32x96xbf16>
    %12 = vector.shape_cast %11 : vector<1x32x96xbf16> to vector<32x96xbf16>
    %cst_9 = arith.constant dense<0.000000e+00> : vector<16x96xf32>
    %13 = tpu.matmul %10, %12, %cst_9 {dimension_numbers = #tpu.dot_dimension_numbers<[1], [0], [0], [1], [0, 0, 1, 1], [], []>} : vector<16x32xbf16>, vector<32x96xbf16>, vector<16x96xf32> -> vector<16x96xf32>
    %c0_10 = arith.constant 0 : index
    %c0_11 = arith.constant 0 : index
    %c0_12 = arith.constant 0 : index
    %14 = vector.load %arg5[%c0_10, %c0_11, %c0_12] : memref<1x1x96xf32, #tpu.memory_space<vmem>>, vector<1x1x96xf32>
    %15 = vector.shape_cast %14 : vector<1x1x96xf32> to vector<1x96xf32>
    %16 = vector.broadcast %15 : vector<1x96xf32> to vector<16x96xf32>
    %17 = arith.addf %13, %16 : vector<16x96xf32>
    %18 = arith.truncf %17 : vector<16x96xf32> to vector<16x96xbf16>
    %19 = vector.extract_strided_slice %18 {offsets = [0, 0], sizes = [16, 24], strides = [1, 1]} : vector<16x96xbf16> to vector<16x24xbf16>
    %20 = vector.extract_strided_slice %18 {offsets = [0, 24], sizes = [16, 24], strides = [1, 1]} : vector<16x96xbf16> to vector<16x24xbf16>
    %21 = vector.extract_strided_slice %18 {offsets = [0, 48], sizes = [16, 24], strides = [1, 1]} : vector<16x96xbf16> to vector<16x24xbf16>
    %22 = vector.extract_strided_slice %18 {offsets = [0, 72], sizes = [16, 24], strides = [1, 1]} : vector<16x96xbf16> to vector<16x24xbf16>
    %23 = vector.shape_cast %19 : vector<16x24xbf16> to vector<1x16x24xbf16>
    %24 = vector.shape_cast %20 : vector<16x24xbf16> to vector<1x16x24xbf16>
    %25 = vector.shape_cast %21 : vector<16x24xbf16> to vector<1x16x24xbf16>
    %26 = vector.shape_cast %22 : vector<16x24xbf16> to vector<1x16x24xbf16>
    %27 = tpu.concatenate %23, %24, %25, %26 in 0 : vector<1x16x24xbf16>, vector<1x16x24xbf16>, vector<1x16x24xbf16>, vector<1x16x24xbf16> -> vector<4x16x24xbf16>
    %28 = vector.extract_strided_slice %27 {offsets = [0, 0, 0], sizes = [4, 16, 8], strides = [1, 1, 1]} : vector<4x16x24xbf16> to vector<4x16x8xbf16>
    %29 = vector.shape_cast %28 : vector<4x16x8xbf16> to vector<8x8x8xbf16>
    %30 = vector.extract_strided_slice %27 {offsets = [0, 0, 8], sizes = [4, 16, 8], strides = [1, 1, 1]} : vector<4x16x24xbf16> to vector<4x16x8xbf16>
    %31 = vector.shape_cast %30 : vector<4x16x8xbf16> to vector<8x8x8xbf16>
    %32 = vector.extract_strided_slice %27 {offsets = [0, 0, 16], sizes = [4, 16, 8], strides = [1, 1, 1]} : vector<4x16x24xbf16> to vector<4x16x8xbf16>
    %33 = vector.shape_cast %32 : vector<4x16x8xbf16> to vector<8x8x8xbf16>
    "tpu.trace_start"() <{level = 10 : i32, message = "gqd,gkd->gqk"}> : () -> ()
    %cst_13 = arith.constant dense<0.000000e+00> : vector<8x8x8xf32>
    %34 = tpu.matmul %29, %31, %cst_13 {dimension_numbers = #tpu.dot_dimension_numbers<[2], [2], [1], [1], [0, 0, 0, 1, 1, 1], [0], [0]>} : vector<8x8x8xbf16>, vector<8x8x8xbf16>, vector<8x8x8xf32> -> vector<8x8x8xf32>
    "tpu.trace_stop"() : () -> ()
    %35 = vector.broadcast %9 : vector<8x1x8xf32> to vector<8x8x8xf32>
    %36 = arith.addf %34, %35 : vector<8x8x8xf32>
    %cst_14 = arith.constant dense<0xFF800000> : vector<8x8xf32>
    %37 = vector.multi_reduction <maximumf>, %36, %cst_14 [2] : vector<8x8x8xf32> to vector<8x8xf32>
    %38 = vector.shape_cast %37 : vector<8x8xf32> to vector<8x8x1xf32>
    %39 = vector.broadcast %38 : vector<8x8x1xf32> to vector<8x8x8xf32>
    %40 = arith.subf %36, %39 : vector<8x8x8xf32>
    %41 = math.exp %40 : vector<8x8x8xf32>
    %cst_15 = arith.constant dense<0.000000e+00> : vector<8x8xf32>
    %42 = vector.multi_reduction <add>, %41, %cst_15 [2] : vector<8x8x8xf32> to vector<8x8xf32>
    %43 = vector.shape_cast %42 : vector<8x8xf32> to vector<8x8x1xf32>
    %44 = tpu.reciprocal %43 {approx = true} : vector<8x8x1xf32> -> vector<8x8x1xf32>
    %45 = vector.broadcast %44 : vector<8x8x1xf32> to vector<8x8x8xf32>
    %46 = arith.mulf %41, %45 : vector<8x8x8xf32>
    %47 = arith.truncf %46 : vector<8x8x8xf32> to vector<8x8x8xbf16>
    "tpu.trace_start"() <{level = 10 : i32, message = "gqk,gkd->gqd"}> : () -> ()
    %cst_16 = arith.constant dense<0.000000e+00> : vector<8x8x8xf32>
    %48 = tpu.matmul %47, %33, %cst_16 {dimension_numbers = #tpu.dot_dimension_numbers<[2], [1], [1], [2], [0, 0, 0, 1, 1, 2], [0], [0]>} : vector<8x8x8xbf16>, vector<8x8x8xbf16>, vector<8x8x8xf32> -> vector<8x8x8xf32>
    "tpu.trace_stop"() : () -> ()
    %49 = arith.truncf %48 : vector<8x8x8xf32> to vector<8x8x8xbf16>
    %50 = vector.extract_strided_slice %49 {offsets = [0, 0, 0], sizes = [2, 8, 8], strides = [1, 1, 1]} : vector<8x8x8xbf16> to vector<2x8x8xbf16>
    %51 = vector.shape_cast %50 : vector<2x8x8xbf16> to vector<16x8xbf16>
    %52 = vector.extract_strided_slice %49 {offsets = [2, 0, 0], sizes = [2, 8, 8], strides = [1, 1, 1]} : vector<8x8x8xbf16> to vector<2x8x8xbf16>
    %53 = vector.shape_cast %52 : vector<2x8x8xbf16> to vector<16x8xbf16>
    %54 = vector.extract_strided_slice %49 {offsets = [4, 0, 0], sizes = [2, 8, 8], strides = [1, 1, 1]} : vector<8x8x8xbf16> to vector<2x8x8xbf16>
    %55 = vector.shape_cast %54 : vector<2x8x8xbf16> to vector<16x8xbf16>
    %56 = vector.extract_strided_slice %49 {offsets = [6, 0, 0], sizes = [2, 8, 8], strides = [1, 1, 1]} : vector<8x8x8xbf16> to vector<2x8x8xbf16>
    %57 = vector.shape_cast %56 : vector<2x8x8xbf16> to vector<16x8xbf16>
    %58 = tpu.concatenate %51, %53, %55, %57 in 1 : vector<16x8xbf16>, vector<16x8xbf16>, vector<16x8xbf16>, vector<16x8xbf16> -> vector<16x32xbf16>
    %c0_17 = arith.constant 0 : index
    %c0_18 = arith.constant 0 : index
    %c0_19 = arith.constant 0 : index
    %59 = vector.load %arg6[%c0_17, %c0_18, %c0_19] : memref<1x32x32xbf16, #tpu.memory_space<vmem>>, vector<1x32x32xbf16>
    %60 = vector.shape_cast %59 : vector<1x32x32xbf16> to vector<32x32xbf16>
    %cst_20 = arith.constant dense<0.000000e+00> : vector<16x32xf32>
    %61 = tpu.matmul %58, %60, %cst_20 {dimension_numbers = #tpu.dot_dimension_numbers<[1], [0], [0], [1], [0, 0, 1, 1], [], []>} : vector<16x32xbf16>, vector<32x32xbf16>, vector<16x32xf32> -> vector<16x32xf32>
    %c0_21 = arith.constant 0 : index
    %c0_22 = arith.constant 0 : index
    %c0_23 = arith.constant 0 : index
    %62 = vector.load %arg7[%c0_21, %c0_22, %c0_23] : memref<1x1x32xf32, #tpu.memory_space<vmem>>, vector<1x1x32xf32>
    %63 = vector.shape_cast %62 : vector<1x1x32xf32> to vector<1x32xf32>
    %64 = vector.broadcast %63 : vector<1x32xf32> to vector<16x32xf32>
    %65 = arith.addf %61, %64 : vector<16x32xf32>
    %66 = arith.addf %3, %65 : vector<16x32xf32>
    %c0_24 = arith.constant 0 : index
    %c0_25 = arith.constant 0 : index
    %c0_26 = arith.constant 0 : index
    %67 = vector.load %arg8[%c0_24, %c0_25, %c0_26] : memref<1x1x32xf32, #tpu.memory_space<vmem>>, vector<1x1x32xf32>
    %68 = vector.shape_cast %67 : vector<1x1x32xf32> to vector<1x32xf32>
    %c0_27 = arith.constant 0 : index
    %c0_28 = arith.constant 0 : index
    %c0_29 = arith.constant 0 : index
    %69 = vector.load %arg9[%c0_27, %c0_28, %c0_29] : memref<1x1x32xf32, #tpu.memory_space<vmem>>, vector<1x1x32xf32>
    %70 = vector.shape_cast %69 : vector<1x1x32xf32> to vector<1x32xf32>
    %cst_30 = arith.constant dense<0.000000e+00> : vector<16xf32>
    %71 = vector.multi_reduction <add>, %66, %cst_30 [1] : vector<16x32xf32> to vector<16xf32>
    %72 = vector.shape_cast %71 : vector<16xf32> to vector<16x1xf32>
    %cst_31 = arith.constant 3.200000e+01 : f32
    %73 = vector.broadcast %cst_31 : f32 to vector<16x1xf32>
    %74 = arith.divf %72, %73 : vector<16x1xf32>
    %75 = vector.broadcast %74 : vector<16x1xf32> to vector<16x32xf32>
    %76 = arith.subf %66, %75 : vector<16x32xf32>
    %77 = arith.mulf %76, %76 : vector<16x32xf32>
    %cst_32 = arith.constant dense<0.000000e+00> : vector<16xf32>
    %78 = vector.multi_reduction <add>, %77, %cst_32 [1] : vector<16x32xf32> to vector<16xf32>
    %79 = vector.shape_cast %78 : vector<16xf32> to vector<16x1xf32>
    %cst_33 = arith.constant 3.200000e+01 : f32
    %80 = vector.broadcast %cst_33 : f32 to vector<16x1xf32>
    %81 = arith.divf %79, %80 : vector<16x1xf32>
    %82 = vector.broadcast %74 : vector<16x1xf32> to vector<16x32xf32>
    %83 = arith.subf %66, %82 : vector<16x32xf32>
    %cst_34 = arith.constant 9.99999996E-13 : f32
    %84 = vector.broadcast %cst_34 : f32 to vector<16x1xf32>
    %85 = arith.addf %81, %84 : vector<16x1xf32>
    %86 = math.rsqrt %85 : vector<16x1xf32>
    %87 = vector.broadcast %86 : vector<16x1xf32> to vector<16x32xf32>
    %88 = arith.mulf %83, %87 : vector<16x32xf32>
    %89 = vector.broadcast %68 : vector<1x32xf32> to vector<16x32xf32>
    %90 = arith.mulf %88, %89 : vector<16x32xf32>
    %91 = vector.broadcast %70 : vector<1x32xf32> to vector<16x32xf32>
    %92 = arith.addf %90, %91 : vector<16x32xf32>
    %93 = arith.truncf %92 : vector<16x32xf32> to vector<16x32xbf16>
    %c0_35 = arith.constant 0 : index
    %c0_36 = arith.constant 0 : index
    %c0_37 = arith.constant 0 : index
    %94 = vector.load %arg10[%c0_35, %c0_36, %c0_37] : memref<1x32x64xbf16, #tpu.memory_space<vmem>>, vector<1x32x64xbf16>
    %95 = vector.shape_cast %94 : vector<1x32x64xbf16> to vector<32x64xbf16>
    %cst_38 = arith.constant dense<0.000000e+00> : vector<16x64xf32>
    %96 = tpu.matmul %93, %95, %cst_38 {dimension_numbers = #tpu.dot_dimension_numbers<[1], [0], [0], [1], [0, 0, 1, 1], [], []>} : vector<16x32xbf16>, vector<32x64xbf16>, vector<16x64xf32> -> vector<16x64xf32>
    %c0_39 = arith.constant 0 : index
    %c0_40 = arith.constant 0 : index
    %c0_41 = arith.constant 0 : index
    %97 = vector.load %arg11[%c0_39, %c0_40, %c0_41] : memref<1x1x64xf32, #tpu.memory_space<vmem>>, vector<1x1x64xf32>
    %98 = vector.shape_cast %97 : vector<1x1x64xf32> to vector<1x64xf32>
    %99 = vector.broadcast %98 : vector<1x64xf32> to vector<16x64xf32>
    %100 = arith.addf %96, %99 : vector<16x64xf32>
    %cst_42 = arith.constant 5.000000e-01 : f32
    %101 = vector.broadcast %cst_42 : f32 to vector<16x64xf32>
    %102 = arith.mulf %101, %100 : vector<16x64xf32>
    %cst_43 = arith.constant 4.471500e-02 : f32
    %103 = vector.broadcast %cst_43 : f32 to vector<16x64xf32>
    %104 = arith.mulf %103, %100 : vector<16x64xf32>
    %105 = arith.mulf %104, %100 : vector<16x64xf32>
    %106 = arith.mulf %105, %100 : vector<16x64xf32>
    %107 = arith.addf %100, %106 : vector<16x64xf32>
    %cst_44 = arith.constant 0.797884583 : f32
    %108 = vector.broadcast %cst_44 : f32 to vector<16x64xf32>
    %109 = arith.mulf %108, %107 : vector<16x64xf32>
    %110 = math.tanh %109 : vector<16x64xf32>
    %cst_45 = arith.constant 1.000000e+00 : f32
    %111 = vector.broadcast %cst_45 : f32 to vector<16x64xf32>
    %112 = arith.addf %111, %110 : vector<16x64xf32>
    %113 = arith.mulf %102, %112 : vector<16x64xf32>
    %114 = arith.truncf %113 : vector<16x64xf32> to vector<16x64xbf16>
    %c0_46 = arith.constant 0 : index
    %c0_47 = arith.constant 0 : index
    %c0_48 = arith.constant 0 : index
    %115 = vector.load %arg12[%c0_46, %c0_47, %c0_48] : memref<1x64x32xbf16, #tpu.memory_space<vmem>>, vector<1x64x32xbf16>
    %116 = vector.shape_cast %115 : vector<1x64x32xbf16> to vector<64x32xbf16>
    %cst_49 = arith.constant dense<0.000000e+00> : vector<16x32xf32>
    %117 = tpu.matmul %114, %116, %cst_49 {dimension_numbers = #tpu.dot_dimension_numbers<[1], [0], [0], [1], [0, 0, 1, 1], [], []>} : vector<16x64xbf16>, vector<64x32xbf16>, vector<16x32xf32> -> vector<16x32xf32>
    %c0_50 = arith.constant 0 : index
    %c0_51 = arith.constant 0 : index
    %c0_52 = arith.constant 0 : index
    %118 = vector.load %arg13[%c0_50, %c0_51, %c0_52] : memref<1x1x32xf32, #tpu.memory_space<vmem>>, vector<1x1x32xf32>
    %119 = vector.shape_cast %118 : vector<1x1x32xf32> to vector<1x32xf32>
    %120 = vector.broadcast %119 : vector<1x32xf32> to vector<16x32xf32>
    %121 = arith.addf %117, %120 : vector<16x32xf32>
    %122 = arith.addf %92, %121 : vector<16x32xf32>
    %c0_53 = arith.constant 0 : index
    %c0_54 = arith.constant 0 : index
    %c0_55 = arith.constant 0 : index
    %123 = vector.load %arg14[%c0_53, %c0_54, %c0_55] : memref<1x1x32xf32, #tpu.memory_space<vmem>>, vector<1x1x32xf32>
    %124 = vector.shape_cast %123 : vector<1x1x32xf32> to vector<1x32xf32>
    %c0_56 = arith.constant 0 : index
    %c0_57 = arith.constant 0 : index
    %c0_58 = arith.constant 0 : index
    %125 = vector.load %arg15[%c0_56, %c0_57, %c0_58] : memref<1x1x32xf32, #tpu.memory_space<vmem>>, vector<1x1x32xf32>
    %126 = vector.shape_cast %125 : vector<1x1x32xf32> to vector<1x32xf32>
    %cst_59 = arith.constant dense<0.000000e+00> : vector<16xf32>
    %127 = vector.multi_reduction <add>, %122, %cst_59 [1] : vector<16x32xf32> to vector<16xf32>
    %128 = vector.shape_cast %127 : vector<16xf32> to vector<16x1xf32>
    %cst_60 = arith.constant 3.200000e+01 : f32
    %129 = vector.broadcast %cst_60 : f32 to vector<16x1xf32>
    %130 = arith.divf %128, %129 : vector<16x1xf32>
    %131 = vector.broadcast %130 : vector<16x1xf32> to vector<16x32xf32>
    %132 = arith.subf %122, %131 : vector<16x32xf32>
    %133 = arith.mulf %132, %132 : vector<16x32xf32>
    %cst_61 = arith.constant dense<0.000000e+00> : vector<16xf32>
    %134 = vector.multi_reduction <add>, %133, %cst_61 [1] : vector<16x32xf32> to vector<16xf32>
    %135 = vector.shape_cast %134 : vector<16xf32> to vector<16x1xf32>
    %cst_62 = arith.constant 3.200000e+01 : f32
    %136 = vector.broadcast %cst_62 : f32 to vector<16x1xf32>
    %137 = arith.divf %135, %136 : vector<16x1xf32>
    %138 = vector.broadcast %130 : vector<16x1xf32> to vector<16x32xf32>
    %139 = arith.subf %122, %138 : vector<16x32xf32>
    %cst_63 = arith.constant 9.99999996E-13 : f32
    %140 = vector.broadcast %cst_63 : f32 to vector<16x1xf32>
    %141 = arith.addf %137, %140 : vector<16x1xf32>
    %142 = math.rsqrt %141 : vector<16x1xf32>
    %143 = vector.broadcast %142 : vector<16x1xf32> to vector<16x32xf32>
    %144 = arith.mulf %139, %143 : vector<16x32xf32>
    %145 = vector.broadcast %124 : vector<1x32xf32> to vector<16x32xf32>
    %146 = arith.mulf %144, %145 : vector<16x32xf32>
    %147 = vector.broadcast %126 : vector<1x32xf32> to vector<16x32xf32>
    %148 = arith.addf %146, %147 : vector<16x32xf32>
    %c0_64 = arith.constant 0 : index
    %c0_65 = arith.constant 0 : index
    %149 = vector.load %arg23[%c0_64, %c0_65] : memref<16x32xf32, #tpu.memory_space<vmem>>, vector<16x32xf32>
    tpu.vector_store %arg23[%c0_64, %c0_65], %148 {strides = array<i32>} : memref<16x32xf32, #tpu.memory_space<vmem>>, vector<16x32xf32>,
    %c1_i32 = arith.constant 1 : i32
    %150 = arith.cmpi eq, %arg1, %c1_i32 : i32
    %151 = arith.extui %150 : i1 to i32
    %c0_i32_66 = arith.constant 0 : i32
    %152 = arith.cmpi ne, %151, %c0_i32_66 : i32
    scf.if %152 {
      %153 = vector.shape_cast %148 : vector<16x32xf32> to vector<2x8x32xf32>
      %154 = vector.shape_cast %4 : vector<2x1x8xf32> to vector<2x8xf32>
      %155 = vector.shape_cast %154 : vector<2x8xf32> to vector<2x8x1xf32>
      %156 = vector.broadcast %155 : vector<2x8x1xf32> to vector<2x8x32xf32>
      %157 = arith.mulf %153, %156 : vector<2x8x32xf32>
      %cst_67 = arith.constant dense<0.000000e+00> : vector<2x32xf32>
      %158 = vector.multi_reduction <add>, %157, %cst_67 [1] : vector<2x8x32xf32> to vector<2x32xf32>
      %cst_68 = arith.constant dense<0.000000e+00> : vector<2xf32>
      %159 = vector.multi_reduction <add>, %154, %cst_68 [1] : vector<2x8xf32> to vector<2xf32>
      %160 = vector.shape_cast %159 : vector<2xf32> to vector<2x1xf32>
      %cst_69 = arith.constant 9.99999971E-10 : f32
      %161 = vector.broadcast %cst_69 : f32 to vector<2x1xf32>
      %162 = arith.maximumf %160, %161 : vector<2x1xf32>
      %163 = tpu.reciprocal %162 {approx = true} : vector<2x1xf32> -> vector<2x1xf32>
      %164 = vector.broadcast %163 : vector<2x1xf32> to vector<2x32xf32>
      %165 = arith.mulf %158, %164 : vector<2x32xf32>
      %c0_70 = arith.constant 0 : index
      %c0_71 = arith.constant 0 : index
      %166 = vector.load %arg18[%c0_70, %c0_71] : memref<1x32xf32, #tpu.memory_space<vmem>>, vector<1x32xf32>
      %167 = vector.broadcast %166 : vector<1x32xf32> to vector<2x32xf32>
      %168 = arith.subf %165, %167 : vector<2x32xf32>
      %c0_72 = arith.constant 0 : index
      %c0_73 = arith.constant 0 : index
      %169 = vector.load %arg19[%c0_72, %c0_73] : memref<1x32xf32, #tpu.memory_space<vmem>>, vector<1x32xf32>
      %cst_74 = arith.constant 9.99999974E-6 : f32
      %170 = vector.broadcast %cst_74 : f32 to vector<1x32xf32>
      %171 = arith.addf %169, %170 : vector<1x32xf32>
      %172 = math.rsqrt %171 : vector<1x32xf32>
      %173 = vector.broadcast %172 : vector<1x32xf32> to vector<2x32xf32>
      %174 = arith.mulf %168, %173 : vector<2x32xf32>
      %c0_75 = arith.constant 0 : index
      %c0_76 = arith.constant 0 : index
      %175 = vector.load %arg16[%c0_75, %c0_76] : memref<1x32xf32, #tpu.memory_space<vmem>>, vector<1x32xf32>
      %176 = vector.broadcast %175 : vector<1x32xf32> to vector<2x32xf32>
      %177 = arith.mulf %174, %176 : vector<2x32xf32>
      %c0_77 = arith.constant 0 : index
      %c0_78 = arith.constant 0 : index
      %178 = vector.load %arg17[%c0_77, %c0_78] : memref<1x32xf32, #tpu.memory_space<vmem>>, vector<1x32xf32>
      %179 = vector.broadcast %178 : vector<1x32xf32> to vector<2x32xf32>
      %180 = arith.addf %177, %179 : vector<2x32xf32>
      %cst_79 = arith.constant 0.000000e+00 : f32
      %181 = vector.broadcast %cst_79 : f32 to vector<2x32xf32>
      %182 = arith.maximumf %180, %181 : vector<2x32xf32>
      %183 = arith.truncf %182 : vector<2x32xf32> to vector<2x32xbf16>
      %c0_80 = arith.constant 0 : index
      %c0_81 = arith.constant 0 : index
      %184 = vector.load %arg20[%c0_80, %c0_81] : memref<32x128xbf16, #tpu.memory_space<vmem>>, vector<32x128xbf16>
      %cst_82 = arith.constant dense<0.000000e+00> : vector<2x128xf32>
      %185 = tpu.matmul %183, %184, %cst_82 {dimension_numbers = #tpu.dot_dimension_numbers<[1], [0], [0], [1], [0, 0, 1, 1], [], []>} : vector<2x32xbf16>, vector<32x128xbf16>, vector<2x128xf32> -> vector<2x128xf32>
      %c0_83 = arith.constant 0 : index
      %c0_84 = arith.constant 0 : index
      %186 = vector.load %arg21[%c0_83, %c0_84] : memref<1x128xf32, #tpu.memory_space<vmem>>, vector<1x128xf32>
      %187 = vector.broadcast %186 : vector<1x128xf32> to vector<2x128xf32>
      %188 = arith.addf %185, %187 : vector<2x128xf32>
      %c0_85 = arith.constant 0 : index
      %c0_86 = arith.constant 0 : index
      %189 = vector.load %arg22[%c0_85, %c0_86] : memref<2x128xf32, #tpu.memory_space<vmem>>, vector<2x128xf32>
      tpu.vector_store %arg22[%c0_85, %c0_86], %188 {strides = array<i32>} : memref<2x128xf32, #tpu.memory_space<vmem>>, vector<2x128xf32>,
    } else {
    }
    return
  }
  func.func @transform_0(%arg0: i32, %arg1: i32) -> (i32, i32, i32) {
    %c0_i32 = arith.constant 0 : i32
    %c0_i32_0 = arith.constant 0 : i32
    %c0_i32_1 = arith.constant 0 : i32
    return %arg0, %c0_i32, %c0_i32_0 : i32, i32, i32
  }
  func.func @transform_1(%arg0: i32, %arg1: i32) -> (i32, i32, i32) {
    %c0_i32 = arith.constant 0 : i32
    %c0_i32_0 = arith.constant 0 : i32
    %c0_i32_1 = arith.constant 0 : i32
    return %arg0, %c0_i32, %c0_i32_0 : i32, i32, i32
  }
  func.func @transform_2(%arg0: i32, %arg1: i32) -> (i32, i32, i32) {
    %c0_i32 = arith.constant 0 : i32
    %c0_i32_0 = arith.constant 0 : i32
    %c0_i32_1 = arith.constant 0 : i32
    return %arg1, %c0_i32, %c0_i32_0 : i32, i32, i32
  }
  func.func @transform_3(%arg0: i32, %arg1: i32) -> (i32, i32, i32) {
    %c0_i32 = arith.constant 0 : i32
    %c0_i32_0 = arith.constant 0 : i32
    %c0_i32_1 = arith.constant 0 : i32
    return %arg1, %c0_i32, %c0_i32_0 : i32, i32, i32
  }
  func.func @transform_4(%arg0: i32, %arg1: i32) -> (i32, i32, i32) {
    %c0_i32 = arith.constant 0 : i32
    %c0_i32_0 = arith.constant 0 : i32
    %c0_i32_1 = arith.constant 0 : i32
    return %arg1, %c0_i32, %c0_i32_0 : i32, i32, i32
  }
  func.func @transform_5(%arg0: i32, %arg1: i32) -> (i32, i32, i32) {
    %c0_i32 = arith.constant 0 : i32
    %c0_i32_0 = arith.constant 0 : i32
    %c0_i32_1 = arith.constant 0 : i32
    return %arg1, %c0_i32, %c0_i32_0 : i32, i32, i32
  }
  func.func @transform_6(%arg0: i32, %arg1: i32) -> (i32, i32, i32) {
    %c0_i32 = arith.constant 0 : i32
    %c0_i32_0 = arith.constant 0 : i32
    %c0_i32_1 = arith.constant 0 : i32
    return %arg1, %c0_i32, %c0_i32_0 : i32, i32, i32
  }
  func.func @transform_7(%arg0: i32, %arg1: i32) -> (i32, i32, i32) {
    %c0_i32 = arith.constant 0 : i32
    %c0_i32_0 = arith.constant 0 : i32
    %c0_i32_1 = arith.constant 0 : i32
    return %arg1, %c0_i32, %c0_i32_0 : i32, i32, i32
  }
  func.func @transform_8(%arg0: i32, %arg1: i32) -> (i32, i32, i32) {
    %c0_i32 = arith.constant 0 : i32
    %c0_i32_0 = arith.constant 0 : i32
    %c0_i32_1 = arith.constant 0 : i32
    return %arg1, %c0_i32, %c0_i32_0 : i32, i32, i32
  }
  func.func @transform_9(%arg0: i32, %arg1: i32) -> (i32, i32, i32) {
    %c0_i32 = arith.constant 0 : i32
    %c0_i32_0 = arith.constant 0 : i32
    %c0_i32_1 = arith.constant 0 : i32
    return %arg1, %c0_i32, %c0_i32_0 : i32, i32, i32
  }
  func.func @transform_10(%arg0: i32, %arg1: i32) -> (i32, i32, i32) {
    %c0_i32 = arith.constant 0 : i32
    %c0_i32_0 = arith.constant 0 : i32
    %c0_i32_1 = arith.constant 0 : i32
    return %arg1, %c0_i32, %c0_i32_0 : i32, i32, i32
  }
  func.func @transform_11(%arg0: i32, %arg1: i32) -> (i32, i32, i32) {
    %c0_i32 = arith.constant 0 : i32
    %c0_i32_0 = arith.constant 0 : i32
    %c0_i32_1 = arith.constant 0 : i32
    return %arg1, %c0_i32, %c0_i32_0 : i32, i32, i32
  }
  func.func @transform_12(%arg0: i32, %arg1: i32) -> (i32, i32, i32) {
    %c0_i32 = arith.constant 0 : i32
    %c0_i32_0 = arith.constant 0 : i32
    %c0_i32_1 = arith.constant 0 : i32
    return %arg1, %c0_i32, %c0_i32_0 : i32, i32, i32
  }
  func.func @transform_13(%arg0: i32, %arg1: i32) -> (i32, i32, i32) {
    %c0_i32 = arith.constant 0 : i32
    %c0_i32_0 = arith.constant 0 : i32
    %c0_i32_1 = arith.constant 0 : i32
    return %arg1, %c0_i32, %c0_i32_0 : i32, i32, i32
  }
  func.func @transform_14(%arg0: i32, %arg1: i32) -> (i32, i32) {
    %c0_i32 = arith.constant 0 : i32
    %c0_i32_0 = arith.constant 0 : i32
    %c0_i32_1 = arith.constant 0 : i32
    return %c0_i32, %c0_i32_0 : i32, i32
  }
  func.func @transform_15(%arg0: i32, %arg1: i32) -> (i32, i32) {
    %c0_i32 = arith.constant 0 : i32
    %c0_i32_0 = arith.constant 0 : i32
    %c0_i32_1 = arith.constant 0 : i32
    return %c0_i32, %c0_i32_0 : i32, i32
  }
  func.func @transform_16(%arg0: i32, %arg1: i32) -> (i32, i32) {
    %c0_i32 = arith.constant 0 : i32
    %c0_i32_0 = arith.constant 0 : i32
    %c0_i32_1 = arith.constant 0 : i32
    return %c0_i32, %c0_i32_0 : i32, i32
  }
  func.func @transform_17(%arg0: i32, %arg1: i32) -> (i32, i32) {
    %c0_i32 = arith.constant 0 : i32
    %c0_i32_0 = arith.constant 0 : i32
    %c0_i32_1 = arith.constant 0 : i32
    return %c0_i32, %c0_i32_0 : i32, i32
  }
  func.func @transform_18(%arg0: i32, %arg1: i32) -> (i32, i32) {
    %c0_i32 = arith.constant 0 : i32
    %c0_i32_0 = arith.constant 0 : i32
    %c0_i32_1 = arith.constant 0 : i32
    return %c0_i32, %c0_i32_0 : i32, i32
  }
  func.func @transform_19(%arg0: i32, %arg1: i32) -> (i32, i32) {
    %c0_i32 = arith.constant 0 : i32
    %c0_i32_0 = arith.constant 0 : i32
    %c0_i32_1 = arith.constant 0 : i32
    return %c0_i32, %c0_i32_0 : i32, i32
  }
  func.func @transform_20(%arg0: i32, %arg1: i32) -> (i32, i32) {
    %c0_i32 = arith.constant 0 : i32
    %c0_i32_0 = arith.constant 0 : i32
    return %arg0, %c0_i32 : i32, i32
  }
}

</mosaic_0001>

<bundles_post_ra>
// kernel: tpu_custom_call.1
= control target key start
LH: loop header
LB: loop body
LE: loop exit
PB: predicated region body
PF: predicated region fallthrough
CT: control target
= control target key end

     0   :  { %s4504_s0 = inlined_call_operand.hbm [shape: f32[2,8,32], index: 0, kind: input, shape index: {}]   ;;  %s4505_s1 = inlined_call_operand.hbm [shape: f32[2,1,8], index: 1, kind: input, shape index: {}]   ;;  %s4506_s2 = inlined_call_operand.vmem [shape: bf16[2,32,96], index: 2, kind: input, shape index: {}]   ;;  %s4507_s3 = inlined_call_operand.hbm [shape: f32[2,1,96], index: 3, kind: input, shape index: {}]   ;;  %s4508_s4 = inlined_call_operand.vmem [shape: bf16[2,32,32], index: 4, kind: input, shape index: {}]   ;;  %s4509_s5 = inlined_call_operand.hbm [shape: f32[2,1,32], index: 5, kind: input, shape index: {}]   ;;  %s4510_s6 = inlined_call_operand.hbm [shape: f32[2,1,32], index: 6, kind: input, shape index: {}]   ;;  %s4511_s7 = inlined_call_operand.hbm [shape: f32[2,1,32], index: 7, kind: input, shape index: {}]   ;;  %s4512_s8 = inlined_call_operand.vmem [shape: bf16[2,32,64], index: 8, kind: input, shape index: {}]   ;;  %s4513_s9 = inlined_call_operand.hbm [shape: f32[2,1,64], index: 9, kind: input, shape index: {}]   ;;  %s4514_s10 = inlined_call_operand.vmem [shape: bf16[2,64,32], index: 10, kind: input, shape index: {}]   ;;  %s4515_s11 = inlined_call_operand.hbm [shape: f32[2,1,32], index: 11, kind: input, shape index: {}]   ;;  %s4516_s12 = inlined_call_operand.hbm [shape: f32[2,1,32], index: 12, kind: input, shape index: {}]   ;;  %s4517_s13 = inlined_call_operand.hbm [shape: f32[2,1,32], index: 13, kind: input, shape index: {}]   ;;  %s4518_s14 = inlined_call_operand.vmem [shape: f32[1,32], index: 14, kind: input, shape index: {}]   ;;  %s4519_s15 = inlined_call_operand.vmem [shape: f32[1,32], index: 15, kind: input, shape index: {}]   ;;  %s4520_s16 = inlined_call_operand.vmem [shape: f32[1,32], index: 16, kind: input, shape index: {}]   ;;  %s4521_s17 = inlined_call_operand.vmem [shape: f32[1,32], index: 17, kind: input, shape index: {}]   ;;  %s4522_s18 = inlined_call_operand.vmem [shape: bf16[32,128], index: 18, kind: input, shape index: {}]   ;;  %s4523_s19 = inlined_call_operand.vmem [shape: f32[1,128], index: 19, kind: input, shape index: {}]   ;;  %s4524_s20 = inlined_call_operand.hbm [shape: f32[2,128], index: 20, kind: output, shape index: {}]  }
   0x1   :  { %4548 = sst [smem:[#allocation27_spill]] %s4504_s0 }
   0x2   :  { %4549 = sst [smem:[#allocation28_spill]] %s4505_s1 }
   0x3   :  { %4550 = sst [smem:[#allocation29_spill]] %s4506_s2 }
   0x4   :  { %4551 = sst [smem:[#allocation30_spill]] %s4507_s3 }
   0x5   :  { %4552 = sst [smem:[#allocation31_spill]] %s4508_s4 }
   0x6   :  { %4553 = sst [smem:[#allocation32_spill]] %s4509_s5 }
   0x7   :  { %4554 = sst [smem:[#allocation33_spill]] %s4510_s6 }
   0x8   :  { %4555 = sst [smem:[#allocation34_spill]] %s4511_s7 }
   0x9   :  { %4556 = sst [smem:[#allocation35_spill]] %s4512_s8 }
   0xa   :  { %4557 = sst [smem:[#allocation36_spill]] %s4514_s10 }
   0xb   :  { %4558 = sst [smem:[#allocation37_spill]] %s4518_s14 }
   0xc   :  { %4559 = sst [smem:[#allocation38_spill]] %s4519_s15 }
   0xd   :  { %4560 = sst [smem:[#allocation39_spill]] %s4520_s16 }
   0xe   :  { %4561 = sst [smem:[#allocation40_spill]] %s4521_s17 }
   0xf   :  { %4562 = sst [smem:[#allocation41_spill]] %s4522_s18 }
  0x10   :  { %4563 = sst [smem:[#allocation42_spill]] %s4523_s19 }
  0x11   :  { %4564 = sst [smem:[#allocation43_spill]] %s4524_s20 }
  0x12   :  { %25 = vsyncpa [#allocation4], 0 }
  0x13   :  { %26 = vsyncpa [#allocation7], 0 }
  0x14   :  { %27 = vsyncpa [#allocation5], 0  ;;  %s3791_s1 = smov 0   ;;  %s3793_s22 = smov 0  }
  0x15   :  { %s3795_s23 = smov 0   ;;  %s3797_s24 = smov 0  }
  0x16   :  { %s3799_s2 = smov 0   ;;  %s3801_s25 = smov 0  }
  0x17 LB: > { %4565 = sst [smem:[#allocation21_spill]] %s3644_s23  ;;  %s3820_s3 = sadd.s32 4294967295, %s3656_s25   ;;  %s3656_s25 = sphi %s3801_s25, %s33_s25   ;;  %s3652_s2 = sphi %s3799_s2, %s4620_s2   ;;  %s3648_s24 = sphi %s3797_s24, %s4619_s24   ;;  %s3644_s23 = sphi %s3795_s23, %s4618_s23   ;;  %s3640_s22 = sphi %s3793_s22, %s4622_s22   ;;  %s3636_s1 = sphi %s3791_s1, %s4621_s1  }
  0x18   : > { %4566 = sst [smem:[#allocation22_spill]] %s3648_s24  ;;  %s42_s26 = sadd.s32 1, %s3652_s2 }
  0x19   : > { %4567 = sst [smem:[#allocation23_spill]] %s3652_s2  ;;  %p43_p0 = scmp.ge.s32.totalorder %s42_s26, 2 }
  0x1a   : > { %4568 = sst [smem:[#allocation24_spill]] %s3656_s25  ;;  %s130_s27 = sadd.s32 1, %s3644_s23 }
  0x1b   : > { %p137_p1 = scmp.ne.s32.totalorder %s3644_s23, %s3640_s22  ;;  %p138_p2 = scmp.eq.s32.totalorder %s3656_s25, 0 }
  0x1c   : > { %s4624_s26 = smov (%p43_p0, %s42_s26), 0  ;;  %p143_p4 = scmp.ne.s32.totalorder %s3640_s22, %s3636_s1 }
  0x1d   : > { %4569 = sst [smem:[#allocation25_spill]] %s4624_s26  ;;  %p3829_p3 = por %p138_p2, %p137_p1 }
  0x1e   : > { %s127_s4 = ssub.s32 %s3652_s2, %s4624_s26  ;;  %p4530_p5 = scmp.eq.s32.totalorder %s3820_s3, 0 }
  0x1f   : > { %s4570_s28 = scalar_select %p3829_p3, 1, 0 }
  0x20   : > { %p128_p6 = scmp.eq.s32.totalorder %s127_s4, 0  ;;  %p2792_p7 = scmp.ge.s32.totalorder %s3656_s25, 1 }
  0x21   : > { %p3840_p8 = por %p4530_p5, %p143_p4  ;;  %p566_p9 = scmp.lt.s32.totalorder %s3656_s25, 3 }
  0x22   : > { %s3846_s30 = scalar_select %p128_p6, %s3644_s23, %s130_s27  }
  0x23   : > { %s4571_s29 = scalar_select %p3840_p8, 1, 0 }
  0x24   : > { %4572 = sst [smem:[#allocation26_spill]] %s3846_s30  ;;  %p3848_p10 = pnand %p2792_p7, %p566_p9 }
  0x25   : > { %s3658_s21 = smov [#allocation3]   ;;  %s4575_s20 = sld [smem:[#allocation27_spill]] }
  0x26   : > { %s4573_s0 = scalar_select %p3848_p10, 1, 0 }
  0x27   : > { %p3105_p11 = pneg %p3848_p10  ;;  %s581_s1 = sshll.u32 %s3658_s21, 4  ;;  %s582_s1 = int_to_ptr.vmem [resolvable:$true] %s581_s1 }
  0x29   : > { %p3856_p12 = pnand %p3105_p11, %p4530_p5 }
  0x2b   : > { %s4574_s4 = scalar_select %p3856_p12, 1, 0 }
  0x2c   : > { %s3272_s19 = scalar_lea.hbm %s4575_s20, 256  ;;  %p4537_p1 = pneg %p3856_p12 }
  0x2d   : > { %p3273_p0 = scmp.ne.s32.totalorder %s4575_s20, %s3272_s19  ;;  %p3279_p6 = scmp.lt.u32.totalorder %s3272_s19, %s4575_s20 }
  0x2f   : > { %p3275_p2 = pnand %p4537_p1, %p3273_p0 }
  0x31   : > { %p3276_p4 = pneg %p3275_p2 }
  0x33   : > { %p3281_p7 = pnand %p3279_p6, %p3276_p4 }
  0x35   : > { %3284 = shalt.err (!%p3281_p7)
}
  0x36   : > { %s3285_s27 = scalar_lea.vmem %s582_s1, 256  ;;  %p3293_p13 = scmp.lt.s32.totalorder %s582_s1, %s582_s1 }
  0x37   : > { %p3286_p9 = scmp.ne.s32.totalorder %s582_s1, %s3285_s27  ;;  %p3294_p8 = scmp.lt.s32.totalorder %s3285_s27, %s3285_s27 }
  0x39   : > { %p3288_p11 = pnand %p3286_p9, %p4537_p1  ;;  %p3295_p10 = por %p3294_p8, %p3293_p13 }
  0x3b   : > { %p3289_p5 = pneg %p3288_p11 }
  0x3d   : > { %p3296_p3 = pnand %p3295_p10, %p3289_p5 }
  0x3f   : > { %3299 = shalt.err (!%p3296_p3)
}
  0x40   : > { %s3659_s14 = smov 128   ;;  %s3660_s15 = smov 8  }
  0x41   : > { %3108 = dma.hbm_to_vmem [thread:$0]  (!%p3856_p12), %s4575_s20, 256, %s582_s1, [#allocation4], %s3659_s14, %s3659_s14, %s3660_s15  }
  0x42   : > { %p4576_p0 = scmp.ne.s32.totalorder %s4570_s28, 0  ;;  %p4577_p2 = scmp.lt.s32.totalorder %s3656_s25, 2 }
  0x43   : > { %s3893_s30 = sand.u32 1, %s3644_s23   ;;  %s3896_s27 = sshll.u32 %s3652_s2, 4 }
  0x44   : > { %p3888_p4 = pnand %p4577_p2, %p4576_p0  ;;  %s4579_s18 = sld [smem:[#allocation30_spill]] }
  0x45   : > { %s640_s28 = scalar_lea.vmem [#allocation8], %s3893_s30  ;;  %s4580_s5 = sld [smem:[#allocation32_spill]] }
  0x46   : > { %s4578_s26 = scalar_select %p3888_p4, 1, 0 }
  0x47   : > { %s647_s1 = sshll.u32 %s640_s28, 4  ;;  %s4581_s19 = sand.u32 1, %s3656_s25   ;;  %s3905_s1 = int_to_ptr.vmem [resolvable:$true] %s647_s1 }
  0x48   : > { %s3915_s20 = scalar_lea.sflag [#allocation4], %s4581_s19  ;;  %p3921_p5 = pneg %p3888_p4 }
  0x4a   : > { %s3902_s10 = scalar_lea.hbm %s4579_s18, %s3896_s27  ;;  %s3305_s14 = scalar_lea.hbm %s4579_s18, 32 }
  0x4b   : > { %s3911_s16 = scalar_lea.hbm %s4580_s5, %s3896_s27  ;;  %s3300_s17 = scalar_lea.hbm %s3902_s10, 16 }
  0x4c   : > { %p3301_p3 = scmp.ne.s32.totalorder %s3902_s10, %s3300_s17  ;;  %p3306_p13 = scmp.lt.u32.totalorder %s3902_s10, %s4579_s18 }
  0x4d   : > { %s4582_s21 = scalar_select %p3921_p5, 1, 0 }
  0x4e   : > { %p3303_p8 = pnand %p3921_p5, %p3301_p3  ;;  %p3307_p6 = scmp.lt.u32.totalorder %s3305_s14, %s3300_s17 }
  0x4f   : > { %p3309_p9 = scmp.lt.u32.totalorder %s3300_s17, %s3902_s10 }
  0x50   : > { %p3304_p10 = pneg %p3303_p8  ;;  %p3308_p7 = por %p3307_p6, %p3306_p13 }
  0x52   : > { %p3310_p11 = por %p3309_p9, %p3308_p7 }
  0x54   : > { %p3311_p0 = pnand %p3310_p11, %p3304_p10 }
  0x56   : > { %3314 = shalt.err (!%p3311_p0)
}
  0x57   : > { %s3315_s19 = scalar_lea.vmem %s3905_s1, 16  ;;  %s3661_s2 = smov [#allocation8]  }
  0x58   : > { %p3316_p2 = scmp.ne.s32.totalorder %s3905_s1, %s3315_s19  ;;  %s3320_s28 = sshll.u32 %s3661_s2, 4  ;;  %s3321_s28 = int_to_ptr.vmem [resolvable:$false] %s3320_s28 }
  0x59   : > { %s3322_s23 = scalar_lea.vmem %s3321_s28, 32  ;;  %p3323_p1 = scmp.lt.s32.totalorder %s3905_s1, %s3321_s28 }
  0x5a   : > { %p3318_p3 = pnand %p3316_p2, %p3921_p5  ;;  %p3324_p12 = scmp.lt.s32.totalorder %s3322_s23, %s3315_s19 }
  0x5c   : > { %p3319_p8 = pneg %p3318_p3  ;;  %p3325_p13 = por %p3324_p12, %p3323_p1 }
  0x5e   : > { %p3326_p6 = pnand %p3325_p13, %p3319_p8 }
  0x60   : > { %3329 = shalt.err (!%p3326_p6)
}
  0x61   : > { %3115 = dma.hbm_to_vmem [thread:$0]  (!%p3888_p4), %s3902_s10, 16, %s3905_s1, %s3915_s20  }
  0x62   : > { %s665_s17 = scalar_lea.vmem [#allocation9], %s3893_s30  ;;  %s4583_s6 = sld [smem:[#allocation33_spill]] }
  0x63   : > { %s672_s14 = sshll.u32 %s665_s17, 4  ;;  %s3330_s28 = scalar_lea.hbm %s3911_s16, 16  ;;  %s673_s14 = int_to_ptr.vmem [resolvable:$true] %s672_s14 }
  0x64   : > { %p3331_p12 = scmp.ne.s32.totalorder %s3911_s16, %s3330_s28  ;;  %s3335_s25 = scalar_lea.hbm %s4580_s5, 32 }
  0x65   : > { %p3336_p7 = scmp.lt.u32.totalorder %s3911_s16, %s4580_s5  ;;  %p3337_p9 = scmp.lt.u32.totalorder %s3335_s25, %s3330_s28 }
  0x66   : > { %p3333_p1 = pnand %p3331_p12, %p3921_p5  ;;  %p3339_p0 = scmp.lt.u32.totalorder %s3330_s28, %s3911_s16 }
  0x67   : > { %p3338_p11 = por %p3337_p9, %p3336_p7 }
  0x68   : > { %s3950_s2 = scalar_lea.hbm %s4583_s6, %s3896_s27  ;;  %p3334_p10 = pneg %p3333_p1 }
  0x69   : > { %p3340_p2 = por %p3339_p0, %p3338_p11 }
  0x6b   : > { %p3341_p3 = pnand %p3340_p2, %p3334_p10 }
  0x6d   : > { %3344 = shalt.err (!%p3341_p3)
}
  0x6e   : > { %s3345_s10 = scalar_lea.vmem %s673_s14, 16  ;;  %s3662_s1 = smov [#allocation9]  }
  0x6f   : > { %p3346_p8 = scmp.ne.s32.totalorder %s673_s14, %s3345_s10  ;;  %s3350_s17 = sshll.u32 %s3662_s1, 4  ;;  %s3351_s17 = int_to_ptr.vmem [resolvable:$false] %s3350_s17 }
  0x70   : > { %s3352_s18 = scalar_lea.vmem %s3351_s17, 32  ;;  %p3353_p12 = scmp.lt.s32.totalorder %s673_s14, %s3351_s17 }
  0x71   : > { %p3348_p13 = pnand %p3346_p8, %p3921_p5  ;;  %p3354_p1 = scmp.lt.s32.totalorder %s3352_s18, %s3345_s10 }
  0x73   : > { %p3349_p6 = pneg %p3348_p13  ;;  %p3355_p4 = por %p3354_p1, %p3353_p12 }
  0x75   : > { %p3356_p7 = pnand %p3355_p4, %p3349_p6 }
  0x77   : > { %3359 = shalt.err (!%p3356_p7)
}
  0x78   : > { %p4584_p9 = scmp.ne.s32.totalorder %s4578_s26, 0  ;;  %s682_s8 = scalar_lea.vmem [#allocation10], %s3893_s30 }
  0x79   : > { %s689_s24 = sshll.u32 %s682_s8, 4  ;;  %s4585_s7 = sld [smem:[#allocation34_spill]]  ;;  %s690_s24 = int_to_ptr.vmem [resolvable:$true] %s689_s24 }
  0x7a   : > { %3118 = dma.hbm_to_vmem [thread:$0]  (!%p4584_p9), %s3911_s16, 16, %s673_s14, %s3915_s20  }
  0x7b   : > { %s3360_s28 = scalar_lea.hbm %s3950_s2, 16  ;;  %s3365_s1 = scalar_lea.hbm %s4583_s6, 32 }
  0x7c   : > { %p3361_p4 = scmp.ne.s32.totalorder %s3950_s2, %s3360_s28  ;;  %p3366_p0 = scmp.lt.u32.totalorder %s3950_s2, %s4583_s6 }
  0x7d   : > { %p3367_p2 = scmp.lt.u32.totalorder %s3365_s1, %s3360_s28  ;;  %p3369_p8 = scmp.lt.u32.totalorder %s3360_s28, %s3950_s2 }
  0x7e   : > { %p3363_p10 = pnand %p3361_p4, %p3921_p5 }
  0x7f   : > { %s3975_s19 = scalar_lea.hbm %s4585_s7, %s3896_s27  ;;  %p3368_p3 = por %p3367_p2, %p3366_p0 }
  0x80   : > { %p3364_p11 = pneg %p3363_p10 }
  0x81   : > { %p3370_p13 = por %p3369_p8, %p3368_p3 }
  0x83   : > { %p3371_p6 = pnand %p3370_p13, %p3364_p11 }
  0x85   : > { %3374 = shalt.err (!%p3371_p6)
}
  0x86   : > { %s3375_s16 = scalar_lea.vmem %s690_s24, 16  ;;  %s3663_s14 = smov [#allocation10]  }
  0x87   : > { %p3376_p12 = scmp.ne.s32.totalorder %s690_s24, %s3375_s16  ;;  %s3380_s8 = sshll.u32 %s3663_s14, 4  ;;  %s3381_s8 = int_to_ptr.vmem [resolvable:$false] %s3380_s8 }
  0x88   : > { %s3382_s25 = scalar_lea.vmem %s3381_s8, 32  ;;  %p3383_p4 = scmp.lt.s32.totalorder %s690_s24, %s3381_s8 }
  0x89   : > { %p3378_p1 = pnand %p3376_p12, %p3921_p5  ;;  %p3384_p10 = scmp.lt.s32.totalorder %s3382_s25, %s3375_s16 }
  0x8b   : > { %p3379_p7 = pneg %p3378_p1  ;;  %p3385_p9 = por %p3384_p10, %p3383_p4 }
  0x8d   : > { %p3386_p0 = pnand %p3385_p9, %p3379_p7 }
  0x8f   : > { %3389 = shalt.err (!%p3386_p0)
}
  0x90   : > { %p4586_p2 = scmp.ne.s32.totalorder %s4578_s26, 0  ;;  %s699_s15 = scalar_lea.vmem [#allocation11], %s3893_s30 }
  0x91   : > { %s706_s28 = sshll.u32 %s699_s15, 4  ;;  %s4000_s1 = scalar_lea.hbm %s4513_s9, %s3896_s27  ;;  %s707_s28 = int_to_ptr.vmem [resolvable:$true] %s706_s28 }
  0x92   : > { %3121 = dma.hbm_to_vmem [thread:$0]  (!%p4586_p2), %s3950_s2, 16, %s690_s24, %s3915_s20  }
  0x93   : > { %s3390_s17 = scalar_lea.hbm %s3975_s19, 16  ;;  %s3395_s14 = scalar_lea.hbm %s4585_s7, 32 }
  0x94   : > { %p3391_p9 = scmp.ne.s32.totalorder %s3975_s19, %s3390_s17  ;;  %p3396_p8 = scmp.lt.u32.totalorder %s3975_s19, %s4585_s7 }
  0x95   : > { %p3397_p13 = scmp.lt.u32.totalorder %s3395_s14, %s3390_s17  ;;  %p3399_p12 = scmp.lt.u32.totalorder %s3390_s17, %s3975_s19 }
  0x96   : > { %p3393_p11 = pnand %p3391_p9, %p3921_p5 }
  0x97   : > { %p3398_p6 = por %p3397_p13, %p3396_p8 }
  0x98   : > { %p3394_p3 = pneg %p3393_p11 }
  0x99   : > { %p3400_p1 = por %p3399_p12, %p3398_p6 }
  0x9b   : > { %p3401_p7 = pnand %p3400_p1, %p3394_p3 }
  0x9d   : > { %3404 = shalt.err (!%p3401_p7)
}
  0x9e   : > { %s3405_s2 = scalar_lea.vmem %s707_s28, 16  ;;  %s3664_s24 = smov [#allocation11]  }
  0x9f   : > { %p3406_p4 = scmp.ne.s32.totalorder %s707_s28, %s3405_s2  ;;  %s3410_s15 = sshll.u32 %s3664_s24, 4  ;;  %s3411_s15 = int_to_ptr.vmem [resolvable:$false] %s3410_s15 }
  0xa0   : > { %s3412_s23 = scalar_lea.vmem %s3411_s15, 32  ;;  %p3413_p9 = scmp.lt.s32.totalorder %s707_s28, %s3411_s15 }
  0xa1   : > { %p3408_p10 = pnand %p3406_p4, %p3921_p5  ;;  %p3414_p11 = scmp.lt.s32.totalorder %s3412_s23, %s3405_s2 }
  0xa3   : > { %p3409_p0 = pneg %p3408_p10  ;;  %p3415_p2 = por %p3414_p11, %p3413_p9 }
  0xa5   : > { %p3416_p8 = pnand %p3415_p2, %p3409_p0 }
  0xa7   : > { %3419 = shalt.err (!%p3416_p8)
}
  0xa8   : > { %p4587_p13 = scmp.ne.s32.totalorder %s4578_s26, 0  ;;  %s724_s10 = scalar_lea.vmem [#allocation12], %s3893_s30 }
  0xa9   : > { %s731_s17 = sshll.u32 %s724_s10, 4  ;;  %s4025_s14 = scalar_lea.hbm %s4515_s11, %s3896_s27  ;;  %s732_s17 = int_to_ptr.vmem [resolvable:$true] %s731_s17 }
  0xaa   : > { %3124 = dma.hbm_to_vmem [thread:$0]  (!%p4587_p13), %s3975_s19, 16, %s707_s28, %s3915_s20  }
  0xab   : > { %s3420_s8 = scalar_lea.hbm %s4000_s1, 16  ;;  %s3425_s24 = scalar_lea.hbm %s4513_s9, 32 }
  0xac   : > { %p3421_p2 = scmp.ne.s32.totalorder %s4000_s1, %s3420_s8  ;;  %p3426_p12 = scmp.lt.u32.totalorder %s4000_s1, %s4513_s9 }
  0xad   : > { %p3427_p1 = scmp.lt.u32.totalorder %s3425_s24, %s3420_s8  ;;  %p3429_p4 = scmp.lt.u32.totalorder %s3420_s8, %s4000_s1 }
  0xae   : > { %p3423_p3 = pnand %p3421_p2, %p3921_p5 }
  0xaf   : > { %p3428_p7 = por %p3427_p1, %p3426_p12 }
  0xb0   : > { %p3424_p6 = pneg %p3423_p3 }
  0xb1   : > { %p3430_p10 = por %p3429_p4, %p3428_p7 }
  0xb3   : > { %p3431_p0 = pnand %p3430_p10, %p3424_p6 }
  0xb5   : > { %3434 = shalt.err (!%p3431_p0)
}
  0xb6   : > { %s3435_s19 = scalar_lea.vmem %s732_s17, 16  ;;  %s3665_s28 = smov [#allocation12]  }
  0xb7   : > { %p3436_p9 = scmp.ne.s32.totalorder %s732_s17, %s3435_s19  ;;  %s3440_s10 = sshll.u32 %s3665_s28, 4  ;;  %s3441_s10 = int_to_ptr.vmem [resolvable:$false] %s3440_s10 }
  0xb8   : > { %s3442_s18 = scalar_lea.vmem %s3441_s10, 32  ;;  %p3443_p2 = scmp.lt.s32.totalorder %s732_s17, %s3441_s10 }
  0xb9   : > { %p3438_p11 = pnand %p3436_p9, %p3921_p5  ;;  %p3444_p3 = scmp.lt.s32.totalorder %s3442_s18, %s3435_s19 }
  0xbb   : > { %p3439_p8 = pneg %p3438_p11  ;;  %p3445_p13 = por %p3444_p3, %p3443_p2 }
  0xbd   : > { %p3446_p1 = pnand %p3445_p13, %p3439_p8 }
  0xbf   : > { %3449 = shalt.err (!%p3446_p1)
}
  0xc0   : > { %p4588_p12 = scmp.ne.s32.totalorder %s4578_s26, 0  ;;  %s749_s16 = scalar_lea.vmem [#allocation13], %s3893_s30 }
  0xc1   : > { %s756_s8 = sshll.u32 %s749_s16, 4  ;;  %s4050_s24 = scalar_lea.hbm %s4516_s12, %s3896_s27  ;;  %s757_s8 = int_to_ptr.vmem [resolvable:$true] %s756_s8 }
  0xc2   : > { %3127 = dma.hbm_to_vmem [thread:$0]  (!%p4588_p12), %s4000_s1, 16, %s732_s17, %s3915_s20  }
  0xc3   : > { %s3450_s15 = scalar_lea.hbm %s4025_s14, 16  ;;  %s3455_s28 = scalar_lea.hbm %s4515_s11, 32 }
  0xc4   : > { %p3451_p13 = scmp.ne.s32.totalorder %s4025_s14, %s3450_s15  ;;  %p3456_p4 = scmp.lt.u32.totalorder %s4025_s14, %s4515_s11 }
  0xc5   : > { %p3457_p10 = scmp.lt.u32.totalorder %s3455_s28, %s3450_s15  ;;  %p3459_p9 = scmp.lt.u32.totalorder %s3450_s15, %s4025_s14 }
  0xc6   : > { %p3453_p6 = pnand %p3451_p13, %p3921_p5 }
  0xc7   : > { %p3458_p0 = por %p3457_p10, %p3456_p4 }
  0xc8   : > { %p3454_p7 = pneg %p3453_p6 }
  0xc9   : > { %p3460_p11 = por %p3459_p9, %p3458_p0 }
  0xcb   : > { %p3461_p8 = pnand %p3460_p11, %p3454_p7 }
  0xcd   : > { %3464 = shalt.err (!%p3461_p8)
}
  0xce   : > { %s3465_s1 = scalar_lea.vmem %s757_s8, 16  ;;  %s3666_s17 = smov [#allocation13]  }
  0xcf   : > { %p3466_p2 = scmp.ne.s32.totalorder %s757_s8, %s3465_s1  ;;  %s3470_s16 = sshll.u32 %s3666_s17, 4  ;;  %s3471_s16 = int_to_ptr.vmem [resolvable:$false] %s3470_s16 }
  0xd0   : > { %s3472_s25 = scalar_lea.vmem %s3471_s16, 32  ;;  %p3473_p13 = scmp.lt.s32.totalorder %s757_s8, %s3471_s16 }
  0xd1   : > { %p3468_p3 = pnand %p3466_p2, %p3921_p5  ;;  %p3474_p6 = scmp.lt.s32.totalorder %s3472_s25, %s3465_s1 }
  0xd3   : > { %p3469_p1 = pneg %p3468_p3  ;;  %p3475_p12 = por %p3474_p6, %p3473_p13 }
  0xd5   : > { %p3476_p4 = pnand %p3475_p12, %p3469_p1 }
  0xd7   : > { %3479 = shalt.err (!%p3476_p4)
}
  0xd8   : > { %p4589_p10 = scmp.ne.s32.totalorder %s4578_s26, 0  ;;  %s766_s2 = scalar_lea.vmem [#allocation14], %s3893_s30 }
  0xd9   : > { %s773_s15 = sshll.u32 %s766_s2, 4  ;;  %s3667_s23 = smov [#allocation6]   ;;  %s4071_s15 = int_to_ptr.vmem [resolvable:$true] %s773_s15 }
  0xda   : > { %3130 = dma.hbm_to_vmem [thread:$0]  (!%p4589_p10), %s4025_s14, 16, %s757_s8, %s3915_s20  }
  0xdb   : > { %s597_s19 = sshll.u32 %s3667_s23, 4  ;;  %s3480_s28 = scalar_lea.hbm %s4050_s24, 16  ;;  %s598_s19 = int_to_ptr.vmem [resolvable:$true] %s597_s19 }
  0xdc   : > { %p3481_p12 = scmp.ne.s32.totalorder %s4050_s24, %s3480_s28  ;;  %s3485_s1 = scalar_lea.hbm %s4516_s12, 32 }
  0xdd   : > { %p3486_p9 = scmp.lt.u32.totalorder %s4050_s24, %s4516_s12  ;;  %p3487_p11 = scmp.lt.u32.totalorder %s3485_s1, %s3480_s28 }
  0xde   : > { %p3483_p7 = pnand %p3481_p12, %p3921_p5  ;;  %p3489_p2 = scmp.lt.u32.totalorder %s3480_s28, %s4050_s24 }
  0xdf   : > { %p3488_p8 = por %p3487_p11, %p3486_p9 }
  0xe0   : > { %p3484_p0 = pneg %p3483_p7 }
  0xe1   : > { %p3490_p3 = por %p3489_p2, %p3488_p8 }
  0xe3   : > { %p3491_p1 = pnand %p3490_p3, %p3484_p0 }
  0xe5   : > { %3494 = shalt.err (!%p3491_p1)
}
  0xe6   : > { %s3495_s14 = scalar_lea.vmem %s4071_s15, 16  ;;  %s3668_s8 = smov [#allocation14]  }
  0xe7   : > { %p3496_p13 = scmp.ne.s32.totalorder %s4071_s15, %s3495_s14  ;;  %s3500_s25 = sshll.u32 %s3668_s8, 4  ;;  %s3501_s25 = int_to_ptr.vmem [resolvable:$false] %s3500_s25 }
  0xe8   : > { %s3502_s2 = scalar_lea.vmem %s3501_s25, 32  ;;  %p3503_p12 = scmp.lt.s32.totalorder %s4071_s15, %s3501_s25 }
  0xe9   : > { %p3498_p6 = pnand %p3496_p13, %p3921_p5  ;;  %p3504_p7 = scmp.lt.s32.totalorder %s3502_s2, %s3495_s14 }
  0xeb   : > { %p3499_p4 = pneg %p3498_p6  ;;  %p3505_p9 = por %p3504_p7, %p3503_p12 }
  0xed   : > { %p3506_p11 = pnand %p3505_p9, %p3499_p4 }
  0xef   : > { %3509 = shalt.err (!%p3506_p11)
}
  0xf0   : > { %3133 = dma.hbm_to_vmem [thread:$0]  (!%p4589_p10), %s4050_s24, 16, %s4071_s15, %s3915_s20  }
  0xf1   : > { %s4590_s10 = sld [smem:[#allocation28_spill]]  ;;  %p4591_p8 = scmp.ne.s32.totalorder %s4574_s4, 0 }
  0xf3   : > { %p4592_p2 = pneg %p4591_p8 }
  0xf7   : > { %s3510_s18 = scalar_lea.hbm %s4590_s10, 32 }
  0xf8   : > { %p3511_p0 = scmp.ne.s32.totalorder %s4590_s10, %s3510_s18  ;;  %p3517_p13 = scmp.lt.u32.totalorder %s3510_s18, %s4590_s10 }
  0xfa   : > { %p3513_p3 = pnand %p3511_p0, %p4592_p2 }
  0xfc   : > { %p3514_p1 = pneg %p3513_p3 }
  0xfe   : > { %p3519_p6 = pnand %p3517_p13, %p3514_p1 }
 0x100   : > { %3522 = shalt.err (!%p3519_p6)
}
 0x101   : > { %s3523_s24 = scalar_lea.vmem %s598_s19, 32  ;;  %p4593_p12 = pmov %p4592_p2 }
 0x102   : > { %p3524_p4 = scmp.ne.s32.totalorder %s598_s19, %s3523_s24  ;;  %p3531_p11 = scmp.lt.s32.totalorder %s598_s19, %s598_s19 }
 0x103   : > { %p3532_p10 = scmp.lt.s32.totalorder %s3523_s24, %s3523_s24 }
 0x104   : > { %p3526_p7 = pnand %p3524_p4, %p4593_p12 }
 0x105   : > { %p3533_p5 = por %p3532_p10, %p3531_p11 }
 0x106   : > { %p3527_p9 = pneg %p3526_p7 }
 0x108   : > { %p3534_p0 = pnand %p3533_p5, %p3527_p9 }
 0x10a   : > { %3537 = shalt.err (!%p3534_p0)
}
 0x10b   : > { %s3669_s15 = smov 16   ;;  %s3670_s8 = smov 1  }
 0x10c   : > { %3111 = dma.hbm_to_vmem [thread:$0]  (!%p4591_p8), %s4590_s10, 32, %s598_s19, [#allocation7], %s3669_s15, %s3669_s15, %s3670_s8  }
 0x10d   : > { %s4119_s18 = scalar_lea.hbm %s4517_s13, %s3896_s27  ;;  %s783_s1 = scalar_lea.vmem [#allocation15], %s3893_s30 }
 0x10e   : > { %s790_s17 = sshll.u32 %s783_s1, 4  ;;  %s3538_s16 = scalar_lea.hbm %s4119_s18, 16  ;;  %s791_s17 = int_to_ptr.vmem [resolvable:$true] %s790_s17 }
 0x10f   : > { %p3539_p5 = scmp.ne.s32.totalorder %s4119_s18, %s3538_s16  ;;  %p4594_p10 = scmp.ne.s32.totalorder %s4582_s21, 0 }
 0x110   : > { %s3543_s19 = scalar_lea.hbm %s4517_s13, 32  ;;  %p3544_p8 = scmp.lt.u32.totalorder %s4119_s18, %s4517_s13 }
 0x111   : > { %p3541_p2 = pnand %p3539_p5, %p4594_p10  ;;  %p3545_p1 = scmp.lt.u32.totalorder %s3543_s19, %s3538_s16 }
 0x112   : > { %p3547_p6 = scmp.lt.u32.totalorder %s3538_s16, %s4119_s18 }
 0x113   : > { %p3542_p3 = pneg %p3541_p2  ;;  %p3546_p13 = por %p3545_p1, %p3544_p8 }
 0x115   : > { %p3548_p4 = por %p3547_p6, %p3546_p13 }
 0x117   : > { %p3549_p12 = pnand %p3548_p4, %p3542_p3 }
 0x119   : > { %3552 = shalt.err (!%p3549_p12)
}
 0x11a   : > { %s3553_s30 = scalar_lea.vmem %s791_s17, 16  ;;  %s3671_s27 = smov [#allocation15]  }
 0x11b   : > { %p3554_p7 = scmp.ne.s32.totalorder %s791_s17, %s3553_s30  ;;  %s3558_s8 = sshll.u32 %s3671_s27, 4  ;;  %s3559_s8 = int_to_ptr.vmem [resolvable:$false] %s3558_s8 }
 0x11c   : > { %s3560_s25 = scalar_lea.vmem %s3559_s8, 32  ;;  %p3561_p0 = scmp.lt.s32.totalorder %s791_s17, %s3559_s8 }
 0x11d   : > { %p3556_p9 = pnand %p3554_p7, %p4594_p10  ;;  %p3562_p5 = scmp.lt.s32.totalorder %s3560_s25, %s3553_s30 }
 0x11f   : > { %p3557_p11 = pneg %p3556_p9  ;;  %p3563_p2 = por %p3562_p5, %p3561_p0 }
 0x121   : > { %p3564_p1 = pnand %p3563_p2, %p3557_p11 }
 0x123   : > { %3567 = shalt.err (!%p3564_p1)
}
 0x124   : > { %p4595_p8 = scmp.ne.s32.totalorder %s4578_s26, 0  ;;  %p4596_p3 = scmp.ne.s32.totalorder %s4573_s0, 0 }
 0x125   : > { %p4597_p10 = scmp.eq.s32.totalorder (!%p4596_p3), %s3820_s3, 0 }
 0x126   : > { %3136 = dma.hbm_to_vmem [thread:$0]  (!%p4595_p8), %s4119_s18, 16, %s791_s17, %s3915_s20  }
 0x127   : > { %799 = sbr.rel (%p4596_p3) target bundleno = 3305 (0xce9), region = 100 }
 0x12e   : > { %3619 = dma.done.wait (%p4597_p10), [#allocation4], 256   ;;  %p4598_p13 = pmov %p4597_p10 }
 0x12f   : > { %p4599_p6 = pmov %p4597_p10 }
 0x130   : > { %3621 = vsyncadd (%p4598_p13), [#allocation4], 4294967040 }
 0x131   : > { %3623 = dma.done.wait (%p4599_p6), [#allocation7], 32   ;;  %p4600_p4 = pmov %p4599_p6 }
 0x132   : > { %s809_s26 = sand.u32 1, %s3820_s3   ;;  %s4152_s20 = sand.u32 1, %s3640_s22  }
 0x133   : > { %3625 = vsyncadd (%p4600_p4), [#allocation7], 4294967264  ;;  %s810_s0 = scalar_lea.sflag [#allocation4], %s809_s26  ;;  %p4601_p12 = scmp.ne.s32.totalorder %s4571_s29, 0 }
 0x135   : > { %3627 = dma.done.wait (%p4601_p12), %s810_s0, 128  }
 0x136   : > { %3629 = vsyncadd (%p4601_p12), %s810_s0, 4294967168  ;;  %s4602_s2 = sld [smem:[#allocation22_spill]]  ;;  %s4603_s16 = sld [smem:[#allocation29_spill]] }
 0x137   : > { %s4604_s19 = sld [smem:[#allocation31_spill]]  ;;  %s4605_s27 = sld [smem:[#allocation35_spill]] }
 0x138   : > { %s4606_s0 = sld [smem:[#allocation36_spill]]  ;;  %s828_s5 = scalar_lea.vmem [#allocation10], %s4152_s20 }
 0x139   : > { %s836_s6 = scalar_lea.vmem [#allocation11], %s4152_s20  ;;  %s844_s1 = scalar_lea.vmem [#allocation12], %s4152_s20 }
 0x13a   : > { %s852_s17 = scalar_lea.vmem [#allocation13], %s4152_s20  ;;  %s868_s7 = scalar_lea.vmem [#allocation15], %s4152_s20 }
 0x13c   : > { %p969_p7 = scmp.lt.s32.totalorder %s4602_s2, 1  ;;  %p2815_p9 = scmp.ne.s32.totalorder %s4602_s2, 0 }
 0x13d   : > { %v994_v0 = vld [vmem:[#allocation3] sm:$0xff] (!%p2815_p9)  ;;  %vm996_vm0 = vcmask (!%p2815_p9), 261120   ;;  %v995_v1 = vld [vmem:[#allocation3 + $0x8] sm:$0xff] (!%p2815_p9) }
 0x13e   : > { %s970_s23 = scalar_select %p969_p7, %s4602_s2, 1 }
 0x13f   : > { %993 = sbr.rel (%p2815_p9) target bundleno = 326 (0x146), region = 144  ;;  %997 = vst.msk [vmem:[#allocation2] sm:$0xff] (!%p2815_p9), %vm996_vm0, %v994_v0  ;;  %998 = vst.msk [vmem:[#allocation2 + $0x8] sm:$0xff] (!%p2815_p9), %vm996_vm0, %v995_v1 }
 0x140   : > { %s2878_s28 = sshll.u32 %s970_s23, 4  ;;  %s2881_s18 = sshll.u32 %s970_s23, 5 }
 0x141   : > { %s973_s4 = scalar_lea.vmem %s4603_s16, %s2878_s28  ;;  %s4167_s24 = scalar_lea.vmem %s4604_s19, %s2878_s28 }
 0x142   : > { %s4172_s8 = scalar_lea.vmem %s4605_s27, %s2878_s28  ;;  %s4177_s21 = scalar_lea.vmem %s4606_s0, %s2881_s18 }
 0x143   : > { %s820_s23 = scalar_lea.vmem [#allocation9], %s4152_s20  ;;  %s860_s16 = scalar_lea.vmem [#allocation14], %s4152_s20 }
 0x146 PF: > { %v3212_v2 = vld [vmem:[%s973_s4] sm:$0xff]   ;;  %v3672_v3 = vmov 0.0   ;;  %v3213_v4 = vld [vmem:[%s973_s4 + $0x8] sm:$0xff]   ;;  %vm3673_vm1 = vmmov 0   ;;  %vm1031_vm2 = vcmask 261120   ;;  %s4607_s2 = scalar_lea.vmem [#allocation8], %s4152_s20  ;;  %v1102_v47 = vlaneseq }
 0x147   : > { %2937 = vmatprep.subr.bf16.mxu0 %v3672_v3  ;;  %2945 = vmatprep.subr.bf16.mxu1 %v3672_v3  ;;  %v4191_v5 = vld [vmem:[#allocation2] sm:$0xff]  ;;  %v4193_v6 = vld [vmem:[#allocation2 + $0x8] sm:$0xff]  ;;  %s3674_s28 = smov 56   ;;  %s3675_s18 = smov 104   ;;  %vm1114_vm3 = vcmask 64512   ;;  %vm1598_vm4 = vcmask 1043456  }
 0x148   : > { %2938 = vmatpush3.bf16.msra.mxu0 %v3212_v2  ;;  %2941 = vmatprep.mubr.msk.bf16.mxu0 %vm3673_vm1, %v3672_v3  ;;  %v1007_v7 = vpack.c.bf16 %v4193_v6, %v4191_v5  ;;  %v2816_v8 = vld [vmem:[%s4607_s2] ss:$0 sm:$0xff]  ;;  %s3676_s4 = smov 120   ;;  %s3677_s14 = smov 80   ;;  %v4279_v50 = vshrl.u32 %v1102_v47, 7  ;;  %vm2015_vm5 = vcmask 130048  }
 0x149   : > { %2939 = vmatprep.subr.bf16.mxu0 %v3672_v3  ;;  %2947 = vmatprep.mubr.msk.bf16.mxu1 %vm3673_vm1, %v3672_v3  ;;  %s3678_s29 = smov 112   ;;  %v4276_v48 = vld [vmem:[#allocation6] sm:$0x1]  ;;  %v4281_v51 = vld [vmem:[#allocation6 + $0x1] sm:$0x1]  ;;  %s3679_s19 = smov 8  }
 0x14a   : > { %v1003_v49 = vsub.f32 1.0, %v4276_v48  ;;  %v4284_v53 = vsub.s32 0, %v4279_v50  ;;  %v1004_v54 = vsub.f32 1.0, %v4281_v51  ;;  %s3680_s15 = smov 16   ;;  %vm2018_vm6 = vcmask 195584  }
 0x14b   : > { %vm2260_vm7 = vcmask 523264  }
 0x14c   : > { %2940 = vmatpush3.bf16.msra.mxu0 %v3213_v4  ;;  %v1005_v52 = vmul.f32 -10000.0, %v1003_v49  ;;  %v1006_v56 = vmul.f32 -10000.0, %v1004_v54 }
 0x14d   : > { %2951 = vmatprep.subr.bf16.mxu0 %v3672_v3 }
 0x14e   : > { %v1105_v55 = vrot.slane %v1005_v52, %v4284_v53  ;;  %v1109_v60 = vrot.slane %v1006_v56, %v4284_v53 }
 0x14f   : > { %2942 = vmatmul.mubr.msk.bf16.vlgmr.msra.gmra.mrb[0].mxu0 %vm1031_vm2, %v1007_v7 }
 0x150   : > { %2953 = vmatprep.mubr.msk.bf16.mxu0 %vm3673_vm1, %v3672_v3 }
 0x222   : > { %v1069_v9 = vpop.f32.mrb[0].mxu0 }
 0x223   : > { %v2943_v10 = vpop.f32.mrb[1].mxu0  ;;  %v1070_v12 = vadd.f32 %v2816_v8, %v1069_v9 }
 0x224   : > { %v1072_v11 = vpop.f32.mrb[2].mxu0 }
 0x225   : > { %v1073_v13 = vadd.f32 %v2816_v8, %v1072_v11  ;;  %v2944_v14 = vpop.f32.mrb[3].mxu0  ;;  %v2882_v16 = vpack.c.bf16 %v1070_v12, %v1070_v12 }
 0x227   : > { %v1076_v15 = vpack.c.bf16 %v1073_v13, %v1070_v12  ;;  %v2883_v17 = vpack.c.bf16 %v1073_v13, %v1073_v13 }
 0x229   : > { %1082 = vrot.lane.b32.xlu1 %v1076_v15, %s3674_s28  ;;  %1078 = vrot.lane.b32.xlu0 %v1076_v15, %s3675_s18 }
 0x22d   : > { %1112 = vrot.lane.b32.xlu1 %v2882_v16, %s3676_s4  ;;  %1080 = vrot.lane.b32.xlu0 %v1076_v15, %s3677_s14 }
 0x231   : > { %1161 = vrot.lane.b32.xlu0 %v2883_v17, %s3676_s4 }
 0x29b   : > { %v1083_v18 = vpop.permute.xlu1 %1082  ;;  %v1079_v19 = vpop.permute.xlu0 %1078 }
 0x29c   : > { %v4206_v20 = vcombine.low %v1079_v19, %v1079_v19  ;;  %v4208_v21 = vcombine.high %v1079_v19, %v1079_v19  ;;  %v4220_v28 = vcombine.low %v1083_v18, %v1083_v18  ;;  %v4222_v29 = vcombine.high %v1083_v18, %v1083_v18 }
 0x29e   : > { %1257 = vrot.lane.b32.xlu0 %v4208_v21, %s3676_s4  ;;  %1209 = vrot.lane.b32.xlu1 %v4206_v20, %s3676_s4 }
 0x29f   : > { %v1113_v22 = vpop.permute.xlu1 %1112  ;;  %v1081_v23 = vpop.permute.xlu0 %1080 }
 0x2a0   : > { %v4212_v24 = vcombine.low %v1081_v23, %v1081_v23  ;;  %v4214_v25 = vcombine.high %v1081_v23, %v1081_v23  ;;  %v1119_v26 = vsel %vm1114_vm3, %v1113_v22, 0 }
 0x2a1   : > { %2946 = vmatpush3.bf16.xpose.msra.mxu1 %v1119_v26 }
 0x2a2   : > { %1353 = vrot.lane.b32.xlu0 %v4214_v25, %s3676_s4  ;;  %1305 = vrot.lane.b32.xlu1 %v4212_v24, %s3676_s4 }
 0x2a3   : > { %v1162_v27 = vpop.permute.xlu0 %1161  ;;  %2957 = vmatprep.subr.bf16.mxu1 %v3672_v3 }
 0x2a4   : > { %v1167_v30 = vsel %vm1114_vm3, %v1162_v27, 0 }
 0x2a5   : > { %2952 = vmatpush3.bf16.xpose.msra.mxu0 %v1167_v30 }
 0x2a6   : > { %1449 = vrot.lane.b32.xlu0 %v4222_v29, %s3676_s4  ;;  %1401 = vrot.lane.b32.xlu1 %v4220_v28, %s3676_s4 }
 0x2a7   : > { %2963 = vmatprep.subr.bf16.mxu0 %v3672_v3 }
 0x2a8   : > { %2948 = vmatmul.mubr.msk.bf16.vlgmr.msra.gmra.mrb[0].mxu1 %vm1114_vm3, %v2882_v16 }
 0x2a9   : > { %2959 = vmatprep.mubr.msk.bf16.mxu1 %vm3673_vm1, %v3672_v3 }
 0x2aa   : > { %1593 = vrot.lane.b32.xlu0 %v2882_v16, %s3678_s29  ;;  %1642 = vrot.lane.b32.xlu1 %v2883_v17, %s3678_s29 }
 0x2ac   : > { %2954 = vmatmul.mubr.msk.bf16.vlgmr.msra.gmra.mrb[4].mxu0 %vm1114_vm3, %v2883_v17 }
 0x2ad   : > { %2965 = vmatprep.mubr.msk.bf16.mxu0 %vm3673_vm1, %v3672_v3 }
 0x310   : > { %v1210_v31 = vpop.permute.xlu1 %1209  ;;  %v1258_v32 = vpop.permute.xlu0 %1257 }
 0x311   : > { %v1215_v33 = vsel %vm1114_vm3, %v1210_v31, 0  ;;  %v1263_v34 = vsel %vm1114_vm3, %v1258_v32, 0 }
 0x312   : > { %2958 = vmatpush3.bf16.xpose.msra.mxu1 %v1215_v33  ;;  %2964 = vmatpush3.bf16.xpose.msra.mxu0 %v1263_v34 }
 0x313   : > { %2969 = vmatprep.subr.bf16.mxu1 %v3672_v3  ;;  %2975 = vmatprep.subr.bf16.mxu0 %v3672_v3 }
 0x314   : > { %v1306_v35 = vpop.permute.xlu1 %1305  ;;  %v1354_v36 = vpop.permute.xlu0 %1353 }
 0x315   : > { %v1311_v37 = vsel %vm1114_vm3, %v1306_v35, 0  ;;  %v1359_v38 = vsel %vm1114_vm3, %v1354_v36, 0 }
 0x318   : > { %v1402_v39 = vpop.permute.xlu1 %1401  ;;  %v1450_v40 = vpop.permute.xlu0 %1449 }
 0x319   : > { %2960 = vmatmul.mubr.msk.bf16.vlgmr.msra.gmra.mrb[4].mxu1 %vm1114_vm3, %v4206_v20  ;;  %2966 = vmatmul.mubr.msk.bf16.vlgmr.msra.gmra.mrb[8].mxu0 %vm1114_vm3, %v4208_v21  ;;  %v1407_v41 = vsel %vm1114_vm3, %v1402_v39, 0  ;;  %v1455_v42 = vsel %vm1114_vm3, %v1450_v40, 0 }
 0x31a   : > { %2970 = vmatpush3.bf16.xpose.msra.mxu1 %v1311_v37  ;;  %2976 = vmatpush3.bf16.xpose.msra.mxu0 %v1359_v38 }
 0x31b   : > { %2971 = vmatprep.mubr.msk.bf16.mxu1 %vm3673_vm1, %v3672_v3  ;;  %2977 = vmatprep.mubr.msk.bf16.mxu0 %vm3673_vm1, %v3672_v3 }
 0x31c   : > { %2981 = vmatprep.subr.bf16.mxu1 %v3672_v3  ;;  %2987 = vmatprep.subr.bf16.mxu0 %v3672_v3  ;;  %v1643_v43 = vpop.permute.xlu1 %1642  ;;  %v1594_v44 = vpop.permute.xlu0 %1593 }
 0x31d   : > { %v1648_v45 = vsel %vm1598_vm4, %v1643_v43, 0  ;;  %v1600_v46 = vsel %vm1598_vm4, %v1594_v44, 0 }
 0x321   : > { %2972 = vmatmul.mubr.msk.bf16.vlgmr.msra.gmra.mrb[8].mxu1 %vm1114_vm3, %v4212_v24  ;;  %2978 = vmatmul.mubr.msk.bf16.vlgmr.msra.gmra.mrb[12].mxu0 %vm1114_vm3, %v4214_v25 }
 0x322   : > { %2982 = vmatpush3.bf16.xpose.msra.mxu1 %v1407_v41  ;;  %2988 = vmatpush3.bf16.xpose.msra.mxu0 %v1455_v42 }
 0x323   : > { %2983 = vmatprep.mubr.msk.bf16.mxu1 %vm3673_vm1, %v3672_v3  ;;  %2989 = vmatprep.mubr.msk.bf16.mxu0 %vm3673_vm1, %v3672_v3 }
 0x324   : > { %2993 = vmatprep.subr.bf16.mxu1 %v3672_v3  ;;  %2999 = vmatprep.subr.bf16.mxu0 %v3672_v3 }
 0x329   : > { %2984 = vmatmul.mubr.msk.bf16.vlgmr.msra.gmra.mrb[12].mxu1 %vm1114_vm3, %v4220_v28  ;;  %2990 = vmatmul.mubr.msk.bf16.vlgmr.msra.gmra.mrb[16].mxu0 %vm1114_vm3, %v4222_v29 }
 0x32a   : > { %2994 = vmatpush3.bf16.msra.mxu1 %v1600_v46  ;;  %3000 = vmatpush3.bf16.msra.mxu0 %v1648_v45 }
 0x32b   : > { %2995 = vmatprep.mubr.msk.bf16.mxu1 %vm3673_vm1, %v3672_v3  ;;  %3001 = vmatprep.mubr.msk.bf16.mxu0 %vm3673_vm1, %v3672_v3 }
 0x32c   : > { %3005 = vmatprep.subr.bf16.mxu1 %v3672_v3  ;;  %3011 = vmatprep.subr.bf16.mxu0 %v3672_v3 }
 0x37b   : > { %v1155_v57 = vpop.f32.mrb[0].mxu1 }
 0x37c   : > { %v1156_v58 = vadd.f32 %v1155_v57, %v1105_v55  ;;  %v2949_v59 = vpop.f32.mrb[1].mxu1 }
 0x37d   : > { %v1158_v61 = vpop.f32.mrb[2].mxu1 }
 0x37e   : > { %v2950_v62 = vpop.f32.mrb[3].mxu1  ;;  %v1497_v63 = vsel %vm1114_vm3, %v1156_v58, -inf }
 0x37f   : > { %1498 = vmax.xlane.f32.xlu1 %v1497_v63  ;;  %v1203_v0 = vpop.f32.mrb[4].mxu0 }
 0x380   : > { %v1204_v1 = vadd.f32 %v1203_v0, %v1109_v60  ;;  %v2955_v2 = vpop.f32.mrb[5].mxu0 }
 0x381   : > { %v1206_v4 = vpop.f32.mrb[6].mxu0 }
 0x382   : > { %v2956_v7 = vpop.f32.mrb[7].mxu0  ;;  %v1500_v8 = vsel %vm1114_vm3, %v1204_v1, -inf }
 0x383   : > { %1501 = vmax.xlane.f32.xlu0 %v1500_v8 }
 0x3ec   : > { %v1251_v9 = vpop.f32.mrb[4].mxu1  ;;  %v1299_v10 = vpop.f32.mrb[8].mxu0 }
 0x3ed   : > { %v1252_v11 = vadd.f32 %v1251_v9, %v1105_v55  ;;  %v1300_v12 = vadd.f32 %v1299_v10, %v1109_v60  ;;  %v2961_v13 = vpop.f32.mrb[5].mxu1  ;;  %v2967_v14 = vpop.f32.mrb[9].mxu0 }
 0x3ee   : > { %v1254_v15 = vpop.f32.mrb[6].mxu1  ;;  %v1302_v16 = vpop.f32.mrb[10].mxu0 }
 0x3ef   : > { %v2962_v17 = vpop.f32.mrb[7].mxu1  ;;  %v2968_v18 = vpop.f32.mrb[11].mxu0  ;;  %v1503_v19 = vsel %vm1114_vm3, %v1252_v11, -inf  ;;  %v1506_v22 = vsel %vm1114_vm3, %v1300_v12, -inf }
 0x3f0   : > { %1504 = vmax.xlane.f32.xlu0 %v1503_v19  ;;  %1507 = vmax.xlane.f32.xlu1 %v1506_v22 }
 0x3f4   : > { %v1347_v23 = vpop.f32.mrb[8].mxu1  ;;  %v1395_v26 = vpop.f32.mrb[12].mxu0 }
 0x3f5   : > { %v4293_v27 = vadd.f32 %v1347_v23, %v1105_v55  ;;  %v1396_v30 = vadd.f32 %v1395_v26, %v1109_v60  ;;  %v2973_v31 = vpop.f32.mrb[9].mxu1  ;;  %v2979_v32 = vpop.f32.mrb[13].mxu0 }
 0x3f6   : > { %v1350_v33 = vpop.f32.mrb[10].mxu1  ;;  %v1398_v34 = vpop.f32.mrb[14].mxu0 }
 0x3f7   : > { %v2974_v35 = vpop.f32.mrb[11].mxu1  ;;  %v2980_v36 = vpop.f32.mrb[15].mxu0  ;;  %v1509_v37 = vsel %vm1114_vm3, %v4293_v27, -inf  ;;  %v1512_v38 = vsel %vm1114_vm3, %v1396_v30, -inf }
 0x3f8   : > { %1510 = vmax.xlane.f32.xlu0 %v1509_v37  ;;  %1513 = vmax.xlane.f32.xlu1 %v1512_v38 }
 0x3fc   : > { %v1443_v39 = vpop.f32.mrb[12].mxu1  ;;  %v1491_v40 = vpop.f32.mrb[16].mxu0 }
 0x3fd   : > { %v4298_v41 = vadd.f32 %v1443_v39, %v1105_v55  ;;  %v1492_v42 = vadd.f32 %v1491_v40, %v1109_v60  ;;  %v2985_v43 = vpop.f32.mrb[13].mxu1  ;;  %v2991_v44 = vpop.f32.mrb[17].mxu0 }
 0x3fe   : > { %v1446_v45 = vpop.f32.mrb[14].mxu1  ;;  %v1494_v46 = vpop.f32.mrb[18].mxu0 }
 0x3ff   : > { %v2986_v47 = vpop.f32.mrb[15].mxu1  ;;  %v2992_v49 = vpop.f32.mrb[19].mxu0  ;;  %v1515_v52 = vsel %vm1114_vm3, %v4298_v41, -inf  ;;  %v1518_v54 = vsel %vm1114_vm3, %v1492_v42, -inf }
 0x400   : > { %1516 = vmax.xlane.f32.xlu0 %v1515_v52  ;;  %1519 = vmax.xlane.f32.xlu1 %v1518_v54 }
 0x40c   : > { %v1499_v55 = vpop.xlane.xlu1 %1498 }
 0x40d   : > { %v1521_v57 = vsub.f32 %v1156_v58, %v1499_v55 }
 0x40f   : > { %v1529_v60 = vmul.f32 1.442695, %v1521_v57 }
 0x410   : > { %v1502_v56 = vpop.xlane.xlu0 %1501 }
 0x411   : > { %1690 = vrot.lane.b32.xlu1 %v4206_v20, %s3678_s29  ;;  %v1522_v59 = vsub.f32 %v1204_v1, %v1502_v56  ;;  %3222 = vpow2.f32 %v1529_v60 }
 0x413   : > { %v1531_v61 = vmul.f32 1.442695, %v1522_v59 }
 0x415   : > { %3224 = vpow2.f32 %v1531_v61 }
 0x416   : > { %1738 = vrot.lane.b32.xlu0 %v4208_v21, %s3678_s29 }
 0x41b   : > { %v3223_v62 = vpop.eup %3222 }
 0x41c   : > { %v1545_v0 = vsel %vm1114_vm3, %v3223_v62, 0.0 }
 0x41f   : > { %v3225_v63 = vpop.eup %3224 }
 0x420   : > { %v1548_v2 = vsel %vm1114_vm3, %v3225_v63, 0.0 }
 0x435   : > { %1546 = vadd.xlane.f32.xlu0 %v1545_v0  ;;  %1549 = vadd.xlane.f32.xlu1 %v1548_v2 }
 0x446   : > { %1786 = vrot.lane.b32.xlu1 %v4212_v24, %s3678_s29 }
 0x47d   : > { %v1505_v20 = vpop.xlane.xlu0 %1504  ;;  %v1508_v21 = vpop.xlane.xlu1 %1507 }
 0x47e   : > { %v1523_v4 = vsub.f32 %v1252_v11, %v1505_v20  ;;  %v1524_v58 = vsub.f32 %v1300_v12, %v1508_v21 }
 0x480   : > { %v1533_v1 = vmul.f32 1.442695, %v1523_v4  ;;  %v1535_v7 = vmul.f32 1.442695, %v1524_v58 }
 0x482   : > { %3226 = vpow2.f32 %v1533_v1 }
 0x483   : > { %3228 = vpow2.f32 %v1535_v7 }
 0x485   : > { %v1514_v8 = vpop.xlane.xlu1 %1513  ;;  %v1511_v23 = vpop.xlane.xlu0 %1510 }
 0x486   : > { %v1526_v9 = vsub.f32 %v1396_v30, %v1514_v8  ;;  %v1525_v26 = vsub.f32 %v4293_v27, %v1511_v23 }
 0x488   : > { %v1539_v10 = vmul.f32 1.442695, %v1526_v9  ;;  %v1537_v31 = vmul.f32 1.442695, %v1525_v26 }
 0x48a   : > { %3230 = vpow2.f32 %v1539_v10 }
 0x48c   : > { %v4311_v13 = vpop.eup %3226 }
 0x48d   : > { %v4313_v14 = vpop.eup %3228  ;;  %v1520_v15 = vpop.xlane.xlu1 %1519  ;;  %v1551_v24 = vsel %vm1114_vm3, %v4311_v13, 0.0 }
 0x48e   : > { %v1528_v16 = vsub.f32 %v1492_v42, %v1520_v15  ;;  %1552 = vadd.xlane.f32.xlu0 %v1551_v24  ;;  %v1554_v11 = vsel %vm1114_vm3, %v4313_v14, 0.0  ;;  %v1517_v30 = vpop.xlane.xlu0 %1516 }
 0x48f   : > { %1555 = vadd.xlane.f32.xlu1 %v1554_v11  ;;  %v1527_v32 = vsub.f32 %v4298_v41, %v1517_v30 }
 0x490   : > { %v1543_v12 = vmul.f32 1.442695, %v1528_v16 }
 0x491   : > { %v1541_v33 = vmul.f32 1.442695, %v1527_v32  ;;  %v1691_v35 = vpop.permute.xlu1 %1690 }
 0x492   : > { %3232 = vpow2.f32 %v1543_v12  ;;  %v1739_v34 = vpop.permute.xlu0 %1738  ;;  %v1696_v45 = vsel %vm1598_vm4, %v1691_v35, 0 }
 0x493   : > { %3234 = vpow2.f32 %v1537_v31  ;;  %v1744_v46 = vsel %vm1598_vm4, %v1739_v34, 0 }
 0x494   : > { %v4319_v17 = vpop.eup %3230  ;;  %3236 = vpow2.f32 %v1541_v33 }
 0x495   : > { %v1560_v18 = vsel %vm1114_vm3, %v4319_v17, 0.0 }
 0x496   : > { %1561 = vadd.xlane.f32.xlu1 %v1560_v18 }
 0x49c   : > { %v4323_v19 = vpop.eup %3232 }
 0x49d   : > { %v1566_v22 = vsel %vm1114_vm3, %v4323_v19, 0.0  ;;  %v4333_v36 = vpop.eup %3234 }
 0x49e   : > { %1567 = vadd.xlane.f32.xlu1 %v1566_v22  ;;  %v4337_v27 = vpop.eup %3236 }
 0x4a4   : > { %1834 = vrot.lane.b32.xlu0 %v4214_v25, %s3678_s29  ;;  %v1557_v25 = vsel %vm1114_vm3, %v4333_v36, 0.0 }
 0x4af   : > { %1882 = vrot.lane.b32.xlu1 %v4220_v28, %s3678_s29  ;;  %v1563_v28 = vsel %vm1114_vm3, %v4337_v27, 0.0 }
 0x4c2   : > { %v1547_v37 = vpop.xlane.xlu0 %1546  ;;  %v1550_v38 = vpop.xlane.xlu1 %1549 }
 0x4c3   : > { %3238 = vrcp.f32 %v1547_v37  ;;  %1558 = vadd.xlane.f32.xlu0 %v1557_v25 }
 0x4c4   : > { %3240 = vrcp.f32 %v1550_v38 }
 0x4c6   : > { %v1787_v47 = vpop.permute.xlu1 %1786 }
 0x4c7   : > { %1564 = vadd.xlane.f32.xlu0 %v1563_v28 }
 0x4cd   : > { %v3239_v39 = vpop.eup %3238 }
 0x4ce   : > { %v3241_v40 = vpop.eup %3240  ;;  %v1577_v41 = vmul.f32 %v3239_v39, %v3223_v62 }
 0x4cf   : > { %v1578_v42 = vmul.f32 %v3241_v40, %v3225_v63  ;;  %v1792_v63 = vsel %vm1598_vm4, %v1787_v47, 0 }
 0x4d0   : > { %v1585_v43 = vpack.c.bf16 %v1577_v41, %v1577_v41 }
 0x4d1   : > { %v1586_v44 = vpack.c.bf16 %v1578_v42, %v1578_v42 }
 0x4d2   : > { %2996 = vmatmul.mubr.msk.bf16.vlgmr.msra.gmra.mrb[16].mxu1 %vm1114_vm3, %v1585_v43 }
 0x4d3   : > { %3002 = vmatmul.mubr.msk.bf16.vlgmr.msra.gmra.mrb[20].mxu0 %vm1114_vm3, %v1586_v44  ;;  %3006 = vmatpush3.bf16.msra.mxu1 %v1696_v45  ;;  %v3214_v44 = vld [vmem:[%s4167_s24] sm:$0xff]   ;;  %v3215_v45 = vld [vmem:[%s4167_s24 + $0x8] sm:$0xff]   ;;  %s3681_s24 = smov 24  }
 0x4d4   : > { %3012 = vmatpush3.bf16.msra.mxu0 %v1744_v46  ;;  %3007 = vmatprep.mubr.msk.bf16.mxu1 %vm3673_vm1, %v3672_v3 }
 0x4d5   : > { %3013 = vmatprep.mubr.msk.bf16.mxu0 %vm3673_vm1, %v3672_v3  ;;  %3017 = vmatprep.subr.bf16.mxu1 %v3672_v3 }
 0x4d6   : > { %3023 = vmatprep.subr.bf16.mxu0 %v3672_v3 }
 0x4dd   : > { %1930 = vrot.lane.b32.xlu0 %v4222_v29, %s3678_s29 }
 0x51b   : > { %v1553_v49 = vpop.xlane.xlu0 %1552 }
 0x51c   : > { %3242 = vrcp.f32 %v1553_v49  ;;  %v1556_v52 = vpop.xlane.xlu1 %1555 }
 0x51d   : > { %3244 = vrcp.f32 %v1556_v52 }
 0x51f   : > { %v1835_v60 = vpop.permute.xlu0 %1834 }
 0x520   : > { %v1840_v29 = vsel %vm1598_vm4, %v1835_v60, 0 }
 0x523   : > { %v1562_v54 = vpop.xlane.xlu1 %1561 }
 0x524   : > { %3246 = vrcp.f32 %v1562_v54 }
 0x526   : > { %v3243_v55 = vpop.eup %3242 }
 0x527   : > { %v3245_v56 = vpop.eup %3244  ;;  %v1579_v57 = vmul.f32 %v3243_v55, %v4311_v13 }
 0x528   : > { %v1580_v59 = vmul.f32 %v3245_v56, %v4313_v14 }
 0x529   : > { %v1587_v61 = vpack.c.bf16 %v1579_v57, %v1579_v57 }
 0x52a   : > { %v1588_v62 = vpack.c.bf16 %v1580_v59, %v1580_v59 }
 0x52b   : > { %3008 = vmatmul.mubr.msk.bf16.vlgmr.msra.gmra.mrb[20].mxu1 %vm1114_vm3, %v1587_v61  ;;  %v1568_v21 = vpop.xlane.xlu1 %1567 }
 0x52c   : > { %3014 = vmatmul.mubr.msk.bf16.vlgmr.msra.gmra.mrb[24].mxu0 %vm1114_vm3, %v1588_v62  ;;  %3018 = vmatpush3.bf16.msra.mxu1 %v1792_v63  ;;  %3248 = vrcp.f32 %v1568_v21 }
 0x52d   : > { %3024 = vmatpush3.bf16.msra.mxu0 %v1840_v29  ;;  %3025 = vmatprep.mubr.msk.bf16.mxu0 %vm3673_vm1, %v3672_v3 }
 0x52e   : > { %3035 = vmatprep.subr.bf16.mxu0 %v3672_v3  ;;  %3019 = vmatprep.mubr.msk.bf16.mxu1 %vm3673_vm1, %v3672_v3  ;;  %v3247_v0 = vpop.eup %3246 }
 0x52f   : > { %3029 = vmatprep.subr.bf16.mxu1 %v3672_v3  ;;  %v1582_v2 = vmul.f32 %v3247_v0, %v4319_v17  ;;  %v1883_v15 = vpop.permute.xlu1 %1882 }
 0x530   : > { %v1888_v11 = vsel %vm1598_vm4, %v1883_v15, 0 }
 0x531   : > { %v1590_v20 = vpack.c.bf16 %v1582_v2, %v1582_v2 }
 0x534   : > { %3026 = vmatmul.mubr.msk.bf16.vlgmr.msra.gmra.mrb[28].mxu0 %vm1114_vm3, %v1590_v20 }
 0x535   : > { %3037 = vmatprep.mubr.msk.bf16.mxu0 %vm3673_vm1, %v3672_v3 }
 0x536   : > { %v3249_v58 = vpop.eup %3248 }
 0x537   : > { %v1584_v7 = vmul.f32 %v3249_v58, %v4323_v19 }
 0x539   : > { %v1592_v13 = vpack.c.bf16 %v1584_v7, %v1584_v7 }
 0x550   : > { %v1559_v4 = vpop.xlane.xlu0 %1558 }
 0x551   : > { %3250 = vrcp.f32 %v1559_v4 }
 0x554   : > { %v1565_v1 = vpop.xlane.xlu0 %1564 }
 0x555   : > { %3252 = vrcp.f32 %v1565_v1  ;;  %v2848_v1 = vld [vmem:[%s820_s23] ss:$0 sm:$0xff] }
 0x558   : > { %v1931_v8 = vpop.permute.xlu0 %1930 }
 0x559   : > { %v1936_v9 = vsel %vm1598_vm4, %v1931_v8, 0 }
 0x55a   : > { %3036 = vmatpush3.bf16.msra.mxu0 %v1936_v9 }
 0x55b   : > { %v3251_v10 = vpop.eup %3250  ;;  %3049 = vmatprep.subr.bf16.mxu0 %v3672_v3 }
 0x55c   : > { %v1581_v14 = vmul.f32 %v3251_v10, %v4333_v36 }
 0x55d   : > { %3038 = vmatmul.mubr.msk.bf16.vlgmr.msra.gmra.mrb[32].mxu0 %vm1114_vm3, %v1592_v13 }
 0x55e   : > { %v1589_v24 = vpack.c.bf16 %v1581_v14, %v1581_v14  ;;  %3053 = vmatprep.mubr.msk.bf16.mxu0 %vm3673_vm1, %v3672_v3 }
 0x55f   : > { %v3253_v16 = vpop.eup %3252 }
 0x560   : > { %3020 = vmatmul.mubr.msk.bf16.vlgmr.msra.gmra.mrb[24].mxu1 %vm1114_vm3, %v1589_v24  ;;  %v1583_v12 = vmul.f32 %v3253_v16, %v4337_v27 }
 0x561   : > { %3030 = vmatpush3.bf16.msra.mxu1 %v1888_v11  ;;  %3031 = vmatprep.mubr.msk.bf16.mxu1 %vm3673_vm1, %v3672_v3 }
 0x562   : > { %3041 = vmatprep.subr.bf16.mxu1 %v3672_v3  ;;  %v1591_v17 = vpack.c.bf16 %v1583_v12, %v1583_v12 }
 0x568   : > { %3032 = vmatmul.mubr.msk.bf16.vlgmr.msra.gmra.mrb[28].mxu1 %vm1114_vm3, %v1591_v17 }
 0x569   : > { %3045 = vmatprep.mubr.msk.bf16.mxu1 %vm3673_vm1, %v3672_v3  ;;  %3042 = vmatpush3.bf16.msra.mxu1 %v3214_v44 }
 0x56a   : > { %3043 = vmatprep.subr.bf16.mxu1 %v3672_v3 }
 0x56d   : > { %3044 = vmatpush3.bf16.msra.mxu1 %v3215_v45 }
 0x56e   : > { %3057 = vmatprep.subr.bf16.mxu1 %v3672_v3 }
 0x5a5   : > { %v1636_v18 = vpop.f32.mrb[16].mxu1 }
 0x5a6   : > { %v1684_v19 = vpop.f32.mrb[20].mxu0  ;;  %v2997_v22 = vpop.f32.mrb[17].mxu1 }
 0x5a7   : > { %v2884_v23 = vpack.c.bf16 %v1684_v19, %v1636_v18  ;;  %v3003_v26 = vpop.f32.mrb[21].mxu0  ;;  %v1639_v30 = vpop.f32.mrb[18].mxu1 }
 0x5a8   : > { %v1687_v31 = vpop.f32.mrb[22].mxu0  ;;  %v2998_v32 = vpop.f32.mrb[19].mxu1 }
 0x5a9   : > { %v3004_v33 = vpop.f32.mrb[23].mxu0  ;;  %v3217_v32 = vld [vmem:[%s4172_s8 + $0x8] sm:$0xff]  }
 0x5fe   : > { %v1732_v34 = vpop.f32.mrb[20].mxu1 }
 0x5ff   : > { %v1780_v35 = vpop.f32.mrb[24].mxu0  ;;  %v3009_v36 = vpop.f32.mrb[21].mxu1 }
 0x600   : > { %v2885_v37 = vpack.c.bf16 %v1780_v35, %v1732_v34  ;;  %v3015_v38 = vpop.f32.mrb[25].mxu0  ;;  %v1735_v25 = vpop.f32.mrb[22].mxu1 }
 0x601   : > { %v1783_v27 = vpop.f32.mrb[26].mxu0  ;;  %v3010_v28 = vpop.f32.mrb[23].mxu1 }
 0x602   : > { %1996 = vrot.lane.b32.xlu1 %v2885_v37, %s3679_s19  ;;  %v3016_v39 = vpop.f32.mrb[27].mxu0  ;;  %v2852_v28 = vld [vmem:[%s828_s5] ss:$0 sm:$0xff]  ;;  %s4608_s5 = sld [smem:[#allocation22_spill]] }
 0x607   : > { %v1876_v40 = vpop.f32.mrb[28].mxu0 }
 0x608   : > { %v3027_v41 = vpop.f32.mrb[29].mxu0  ;;  %p2866_p11 = scmp.ne.s32.totalorder %s4608_s5, 1 }
 0x609   : > { %v1879_v42 = vpop.f32.mrb[30].mxu0  ;;  %vm2405_vm8 = vcmask (!%p2866_p11), 58368   ;;  %s4609_s20 = sld [smem:[#allocation41_spill]] (!%p2866_p11)  ;;  %vm3684_vm9 = vmmov (!%p2866_p11), 0   ;;  %s4610_s25 = sld [smem:[#allocation40_spill]] (!%p2866_p11)  ;;  %vm2475_vm10 = vcmask (!%p2866_p11), 1041409  }
 0x60a   : > { %v3028_v43 = vpop.f32.mrb[31].mxu0  ;;  %v2853_v42 = vld [vmem:[%s836_s6] ss:$0 sm:$0xff]  ;;  %s4611_s23 = sld [smem:[#allocation39_spill]] (!%p2866_p11)  ;;  %s4613_s18 = sld [smem:[#allocation38_spill]] (!%p2866_p11) }
 0x60b   : > { %s4614_s29 = sld [smem:[#allocation42_spill]] (!%p2866_p11) }
 0x630   : > { %v1972_v46 = vpop.f32.mrb[32].mxu0 }
 0x631   : > { %v3039_v47 = vpop.f32.mrb[33].mxu0 }
 0x632   : > { %v1975_v49 = vpop.f32.mrb[34].mxu0  ;;  %v3218_v47 = vld [vmem:[%s4177_s21] sm:$0xff]  }
 0x633   : > { %v1828_v52 = vpop.f32.mrb[24].mxu1  ;;  %v3040_v54 = vpop.f32.mrb[35].mxu0  ;;  %v3219_v49 = vld [vmem:[%s4177_s21 + $0x8] sm:$0xff]  }
 0x634   : > { %v2886_v55 = vpack.c.bf16 %v1876_v40, %v1828_v52  ;;  %v3021_v56 = vpop.f32.mrb[25].mxu1  ;;  %v3220_v52 = vld [vmem:[%s4177_s21 + $0x10] sm:$0xff]   ;;  %v3221_v54 = vld [vmem:[%s4177_s21 + $0x18] sm:$0xff]  }
 0x635   : > { %v1831_v57 = vpop.f32.mrb[26].mxu1 }
 0x636   : > { %v3022_v59 = vpop.f32.mrb[27].mxu1  ;;  %2003 = vrot.lane.b32.xlu0 %v2886_v55, %s3680_s15  ;;  %v2854_v55 = vld [vmem:[%s844_s1] ss:$0 sm:$0xff] }
 0x63b   : > { %v1924_v60 = vpop.f32.mrb[28].mxu1 }
 0x63c   : > { %v2887_v61 = vpack.c.bf16 %v1972_v46, %v1924_v60  ;;  %v3033_v62 = vpop.f32.mrb[29].mxu1 }
 0x63d   : > { %v1927_v63 = vpop.f32.mrb[30].mxu1 }
 0x63e   : > { %v3034_v29 = vpop.f32.mrb[31].mxu1  ;;  %2010 = vrot.lane.b32.xlu1 %v2887_v61, %s3681_s24 }
 0x674   : > { %v1997_v0 = vpop.permute.xlu1 %1996 }
 0x675   : > { %v2014_v20 = vsel %vm1114_vm3, %v2884_v23, %v1997_v0 }
 0x6a8   : > { %v2004_v2 = vpop.permute.xlu0 %2003 }
 0x6a9   : > { %v2017_v21 = vsel %vm2015_vm5, %v2014_v20, %v2004_v2 }
 0x6b0   : > { %v2011_v4 = vpop.permute.xlu1 %2010 }
 0x6b1   : > { %v2020_v58 = vsel %vm2018_vm6, %v2017_v21, %v2011_v4 }
 0x6b2   : > { %3046 = vmatmul.mubr.msk.bf16.vlgmr.msra.gmra.mrb[32].mxu1 %vm1031_vm2, %v2020_v58 }
 0x6b3   : > { %3065 = vmatprep.mubr.msk.bf16.mxu1 %vm3673_vm1, %v3672_v3  ;;  %3058 = vmatpush3.bf16.msra.mxu1 %v3218_v47 }
 0x6b4   : > { %3059 = vmatprep.subr.bf16.mxu1 %v3672_v3 }
 0x6b7   : > { %3060 = vmatpush3.bf16.msra.mxu1 %v3219_v49  ;;  %v2865_v49 = vld [vmem:[%s868_s7] ss:$0 sm:$0xff] }
 0x6b8   : > { %3061 = vmatprep.subr.bf16.mxu1 %v3672_v3 }
 0x6bb   : > { %3062 = vmatpush3.bf16.msra.mxu1 %v3220_v52 }
 0x6bc   : > { %3063 = vmatprep.subr.bf16.mxu1 %v3672_v3 }
 0x6bf   : > { %3064 = vmatpush3.bf16.msra.mxu1 %v3221_v54 }
 0x785   : > { %v2080_v7 = vpop.f32.mrb[32].mxu1 }
 0x786   : > { %v2081_v8 = vadd.f32 %v2848_v1, %v2080_v7  ;;  %v3047_v9 = vpop.f32.mrb[33].mxu1 }
 0x787   : > { %v2083_v10 = vpop.f32.mrb[34].mxu1 }
 0x788   : > { %v2084_v13 = vadd.f32 %v2848_v1, %v2083_v10  ;;  %v3048_v14 = vpop.f32.mrb[35].mxu1  ;;  %v2087_v15 = vadd.f32 %v2081_v8, %v4191_v5 }
 0x78a   : > { %v2091_v24 = vsel %vm1031_vm2, %v2087_v15, 0.0  ;;  %v2088_v16 = vadd.f32 %v2084_v13, %v4193_v6  ;;  %v3216_v6 = vld [vmem:[%s4172_s8] sm:$0xff]  }
 0x78b   : > { %2092 = vadd.xlane.f32.xlu0 %v2091_v24  ;;  %3050 = vmatpush3.bf16.msra.mxu0 %v3216_v6 }
 0x78c   : > { %v2094_v11 = vsel %vm1031_vm2, %v2088_v16, 0.0  ;;  %3051 = vmatprep.subr.bf16.mxu0 %v3672_v3 }
 0x78d   : > { %2095 = vadd.xlane.f32.xlu1 %v2094_v11  ;;  %v2858_v11 = vld [vmem:[%s852_s17] ss:$0 sm:$0xff] }
 0x78f   : > { %3052 = vmatpush3.bf16.msra.mxu0 %v3217_v32 }
 0x818   : > { %v2093_v12 = vpop.xlane.xlu0 %2092 }
 0x819   : > { %v2098_v17 = vmul.f32 0.03125, %v2093_v12 }
 0x81a   : > { %v2096_v18 = vpop.xlane.xlu1 %2095 }
 0x81b   : > { %v2100_v19 = vsub.f32 %v2087_v15, %v2098_v17  ;;  %v2099_v22 = vmul.f32 0.03125, %v2096_v18 }
 0x81d   : > { %v2101_v23 = vsub.f32 %v2088_v16, %v2099_v22  ;;  %v2102_v26 = vmul.f32 %v2100_v19, %v2100_v19 }
 0x81f   : > { %v2104_v30 = vsel %vm1031_vm2, %v2102_v26, 0.0  ;;  %v2103_v5 = vmul.f32 %v2101_v23, %v2101_v23 }
 0x820   : > { %2105 = vadd.xlane.f32.xlu0 %v2104_v30 }
 0x821   : > { %v2107_v31 = vsel %vm1031_vm2, %v2103_v5, 0.0 }
 0x824   : > { %2108 = vadd.xlane.f32.xlu0 %v2107_v31 }
 0x8ad   : > { %v2106_v33 = vpop.xlane.xlu0 %2105 }
 0x8ae   : > { %v2110_v34 = vmul.f32 0.03125, %v2106_v33 }
 0x8b0   : > { %v2112_v35 = vadd.f32 1e-12, %v2110_v34 }
 0x8b1   : > { %v2109_v36 = vpop.xlane.xlu0 %2108 }
 0x8b2   : > { %3254 = vrsqrt.f32 %v2112_v35  ;;  %v2111_v37 = vmul.f32 0.03125, %v2109_v36 }
 0x8b4   : > { %v2113_v38 = vadd.f32 1e-12, %v2111_v37 }
 0x8b6   : > { %3256 = vrsqrt.f32 %v2113_v38 }
 0x8bc   : > { %v3255_v25 = vpop.eup %3254 }
 0x8bd   : > { %v2116_v27 = vmul.f32 %v3255_v25, %v2100_v19 }
 0x8bf   : > { %v2124_v40 = vmul.f32 %v2852_v28, %v2116_v27 }
 0x8c0   : > { %v3257_v39 = vpop.eup %3256 }
 0x8c1   : > { %v2117_v41 = vmul.f32 %v3257_v39, %v2101_v23  ;;  %v2132_v44 = vadd.f32 %v2853_v42, %v2124_v40 }
 0x8c3   : > { %v2125_v43 = vmul.f32 %v2852_v28, %v2117_v41 }
 0x8c5   : > { %v2133_v45 = vadd.f32 %v2853_v42, %v2125_v43 }
 0x8c7   : > { %v2134_v46 = vpack.c.bf16 %v2133_v45, %v2132_v44 }
 0x8c9   : > { %3054 = vmatmul.mubr.msk.bf16.vlgmr.msra.gmra.mrb[36].mxu0 %vm1031_vm2, %v2134_v46 }
 0x99c   : > { %v2195_v56 = vpop.f32.mrb[36].mxu0 }
 0x99d   : > { %v2196_v57 = vadd.f32 %v2854_v55, %v2195_v56  ;;  %v3055_v59 = vpop.f32.mrb[37].mxu0 }
 0x99e   : > { %v2198_v60 = vpop.f32.mrb[38].mxu0  ;;  %v2360_v59 = vrot.slane (!%p2866_p11), %v4276_v48, %v4284_v53 }
 0x99f   : > { %v2204_v61 = vmul.f32 0.044715, %v2196_v57  ;;  %v2199_v62 = vadd.f32 %v2854_v55, %v2198_v60  ;;  %v3056_v63 = vpop.f32.mrb[39].mxu0  ;;  %v2202_v10 = vmul.f32 0.5, %v2196_v57  ;;  %v3682_v60 = vmov (!%p2866_p11), 1966171168  }
 0x9a1   : > { %v2206_v29 = vmul.f32 %v2204_v61, %v2196_v57  ;;  %v2205_v0 = vmul.f32 0.044715, %v2199_v62  ;;  %v2203_v13 = vmul.f32 0.5, %v2199_v62  ;;  %v2391_v61 = vunpack.c.l.s4 (!%p2866_p11), %v3682_v60 }
 0x9a3   : > { %v2208_v2 = vmul.f32 %v2206_v29, %v2196_v57  ;;  %v2207_v20 = vmul.f32 %v2205_v0, %v2199_v62  ;;  %v2392_v63 = vunpack.c.0.s8 (!%p2866_p11), %v2391_v61 }
 0x9a5   : > { %v2210_v21 = vadd.f32 %v2208_v2, %v2196_v57  ;;  %v2209_v4 = vmul.f32 %v2207_v20, %v2199_v62  ;;  %v2395_v29 = vsub.s32 (!%p2866_p11), %v2392_v63, %v4279_v50 }
 0x9a7   : > { %v2212_v58 = vmul.f32 0.7978846, %v2210_v21  ;;  %v2211_v1 = vadd.f32 %v2209_v4, %v2199_v62  ;;  %v2389_v62 = vcombine.low (!%p2866_p11), %v4276_v48, %v4281_v51  ;;  %v2367_v21 = vrot.slane (!%p2866_p11), %v4281_v51, %v4284_v53  ;;  %v3266_v4 = vld [vmem:[%s4609_s20] sm:$0xff] (!%p2866_p11)   ;;  %v3267_v48 = vld [vmem:[%s4609_s20 + $0x8] sm:$0xff] (!%p2866_p11)  }
 0x9a9   : > { %3258 = vtanh.f32 %v2212_v58  ;;  %v2213_v3 = vmul.f32 0.7978846, %v2211_v1  ;;  %v2396_v0 = vrot.slane (!%p2866_p11), %v2389_v62, %v2395_v29  ;;  %v3683_v58 = vmov (!%p2866_p11), 0.0  }
 0x9aa   : > { %3069 = vmatprep.subr.bf16.mxu0 (!%p2866_p11), %v3683_v58  ;;  %3073 = vmatprep.mubr.msk.bf16.mxu0 (!%p2866_p11), %vm3684_vm9, %v3683_v58 }
 0x9ab   : > { %3260 = vtanh.f32 %v2213_v3  ;;  %v2403_v2 = vrot.slane (!%p2866_p11), %v2396_v0, %v2395_v29  ;;  %3070 = vmatpush3.bf16.msra.mxu0 (!%p2866_p11), %v3266_v4 }
 0x9ac   : > { %3071 = vmatprep.subr.bf16.mxu0 (!%p2866_p11), %v3683_v58 }
 0x9ad   : > { %v2406_v20 = vsel (!%p2866_p11), %vm2405_vm8, %v2403_v2, 0.0 }
 0x9af   : > { %3072 = vmatpush3.bf16.msra.mxu0 (!%p2866_p11), %v3267_v48 }
 0x9b3   : > { %v3259_v7 = vpop.eup %3258 }
 0x9b4   : > { %v2216_v8 = vadd.f32 1.0, %v3259_v7 }
 0x9b5   : > { %v3261_v9 = vpop.eup %3260 }
 0x9b6   : > { %v2217_v14 = vadd.f32 1.0, %v3261_v9  ;;  %v2218_v15 = vmul.f32 %v2216_v8, %v2202_v10  ;;  %v2426_v8 = vld [vmem:[%s4610_s25] sm:$0x1] (!%p2866_p11) }
 0x9b7   : > { %v2427_v9 = vadd.f32 (!%p2866_p11), 1e-05, %v2426_v8 }
 0x9b8   : > { %v2219_v24 = vmul.f32 %v2217_v14, %v2203_v13 }
 0x9ba   : > { %v2220_v16 = vpack.c.bf16 %v2219_v24, %v2218_v15 }
 0x9bc   : > { %3066 = vmatmul.mubr.msk.bf16.vlgmr.msra.gmra.mrb[36].mxu1 %vm2260_vm7, %v2220_v16 }
 0xa8f   : > { %v2298_v12 = vpop.f32.mrb[36].mxu1 }
 0xa90   : > { %v2299_v17 = vadd.f32 %v2858_v11, %v2298_v12  ;;  %v3067_v18 = vpop.f32.mrb[37].mxu1 }
 0xa91   : > { %v2301_v19 = vpop.f32.mrb[38].mxu1 }
 0xa92   : > { %v2302_v22 = vadd.f32 %v2858_v11, %v2301_v19  ;;  %v3068_v23 = vpop.f32.mrb[39].mxu1  ;;  %v2305_v26 = vadd.f32 %v2299_v17, %v2132_v44 }
 0xa94   : > { %v2309_v30 = vsel %vm1031_vm2, %v2305_v26, 0.0  ;;  %v2306_v5 = vadd.f32 %v2302_v22, %v2133_v45  ;;  %v2864_v45 = vld [vmem:[%s860_s16] ss:$0 sm:$0xff]  ;;  %s4612_s16 = sld [smem:[#allocation37_spill]] (!%p2866_p11) }
 0xa95   : > { %2310 = vadd.xlane.f32.xlu1 %v2309_v30  ;;  %v2867_v30 = vld [vmem:[%s4611_s23] ss:$0 sm:$0xff] (!%p2866_p11) }
 0xa96   : > { %v2312_v31 = vsel %vm1031_vm2, %v2306_v5, 0.0 }
 0xa97   : > { %2313 = vadd.xlane.f32.xlu0 %v2312_v31 }
 0xb22   : > { %v2311_v6 = vpop.xlane.xlu1 %2310 }
 0xb23   : > { %v2315_v32 = vmul.f32 0.03125, %v2311_v6 }
 0xb24   : > { %v2314_v33 = vpop.xlane.xlu0 %2313 }
 0xb25   : > { %v2317_v34 = vsub.f32 %v2305_v26, %v2315_v32  ;;  %v2316_v35 = vmul.f32 0.03125, %v2314_v33 }
 0xb27   : > { %v2318_v36 = vsub.f32 %v2306_v5, %v2316_v35  ;;  %v2319_v37 = vmul.f32 %v2317_v34, %v2317_v34 }
 0xb29   : > { %v2321_v38 = vsel %vm1031_vm2, %v2319_v37, 0.0  ;;  %v2320_v25 = vmul.f32 %v2318_v36, %v2318_v36 }
 0xb2a   : > { %2322 = vadd.xlane.f32.xlu1 %v2321_v38 }
 0xb2b   : > { %v2324_v27 = vsel %vm1031_vm2, %v2320_v25, 0.0 }
 0xb2c   : > { %2325 = vadd.xlane.f32.xlu0 %v2324_v27  ;;  %v2869_v27 = vld [vmem:[%s4613_s18] ss:$0 sm:$0xff] (!%p2866_p11) }
 0xb30   : > { %2407 = vadd.xlane.f32.xlu0 (!%p2866_p11), %v2406_v20 }
 0xb3b   : > { %2362 = vbcast.lane.b32.xlu1 (!%p2866_p11), %v2360_v59, 256 }
 0xb46   : > { %2369 = vbcast.lane.b32.xlu0 (!%p2866_p11), %v2367_v21, 256 }
 0xbb7   : > { %v2323_v28 = vpop.xlane.xlu1 %2322 }
 0xbb8   : > { %v2327_v39 = vmul.f32 0.03125, %v2323_v28 }
 0xbb9   : > { %v2326_v40 = vpop.xlane.xlu0 %2325 }
 0xbba   : > { %v2329_v41 = vadd.f32 1e-12, %v2327_v39  ;;  %v2328_v42 = vmul.f32 0.03125, %v2326_v40 }
 0xbbb   : > { %v2363_v50 = vpop.permute.xlu1 (!%p2866_p11), %2362 }
 0xbbc   : > { %3262 = vrsqrt.f32 %v2329_v41  ;;  %v2330_v43 = vadd.f32 1e-12, %v2328_v42 }
 0xbbd   : > { %v2408_v13 = vpop.xlane.xlu0 (!%p2866_p11), %2407 }
 0xbbe   : > { %3264 = vrsqrt.f32 %v2330_v43  ;;  %v2409_v14 = vmax.f32 (!%p2866_p11), %v2408_v13, 1e-09 }
 0xbbf   : > { %3268 = vrsqrt.f32 (!%p2866_p11), %v2427_v9 }
 0xbc0   : > { %3270 = vrcp.f32 (!%p2866_p11), %v2409_v14 }
 0xbc1   : > { %v2370_v24 = vpop.permute.xlu0 (!%p2866_p11), %2369 }
 0xbc6   : > { %v3263_v44 = vpop.eup %3262 }
 0xbc7   : > { %v2333_v46 = vmul.f32 %v3263_v44, %v2317_v34  ;;  %v2868_v34 = vld [vmem:[%s4612_s16] ss:$0 sm:$0xff] (!%p2866_p11) }
 0xbc8   : > { %v3265_v47 = vpop.eup %3264 }
 0xbc9   : > { %v2341_v52 = vmul.f32 %v2864_v45, %v2333_v46  ;;  %v2334_v54 = vmul.f32 %v3265_v47, %v2318_v36  ;;  %2356 = sbr.rel (%p2866_p11) target bundleno = 3274 (0xcca), region = 148  ;;  %v3269_v22 = vpop.eup (!%p2866_p11), %3268 }
 0xbca   : > { %v3271_v26 = vpop.eup (!%p2866_p11), %3270  ;;  %v2433_v31 = vrot.slane (!%p2866_p11), %v3269_v22, %v4284_v53 }
 0xbcb   : > { %v2349_v55 = vadd.f32 %v2865_v49, %v2341_v52  ;;  %v2342_v56 = vmul.f32 %v2864_v45, %v2334_v54  ;;  %v2412_v35 = vrot.slane (!%p2866_p11), %v3271_v26, 1 }
 0xbcd   : > { %2351 = vst.msk [vmem:[#allocation2] sm:$0xff] %vm1031_vm2, %v2349_v55  ;;  %v2350_v57 = vadd.f32 %v2865_v49, %v2342_v56  ;;  %v2371_v1 = vmul.f32 (!%p2866_p11), %v2363_v50, %v2349_v55  ;;  %v2870_v55 = vld [vmem:[%s4614_s29] ss:$0 sm:$0xff] (!%p2866_p11) }
 0xbcf   : > { %2352 = vst.msk [vmem:[#allocation2 + $0x8] sm:$0xff] %vm1031_vm2, %v2350_v57  ;;  %v2373_v51 = vsel (!%p2866_p11), %vm1031_vm2, %v2371_v1, 0.0  ;;  %v2372_v16 = vmul.f32 (!%p2866_p11), %v2370_v24, %v2350_v57 }
 0xbd0   : > { %v2374_v3 = vrot.slane %v2373_v51, 4 }
 0xbd1   : > { %v2380_v12 = vsel %vm1031_vm2, %v2372_v16, 0.0 }
 0xbd2   : > { %v2375_v7 = vadd.f32 %v2374_v3, %v2373_v51  ;;  %v2381_v17 = vrot.slane %v2380_v12, 4 }
 0xbd4   : > { %v2376_v10 = vrot.slane %v2375_v7, 2  ;;  %v2382_v19 = vadd.f32 %v2381_v17, %v2380_v12 }
 0xbd6   : > { %v2377_v15 = vadd.f32 %v2376_v10, %v2375_v7  ;;  %v2383_v23 = vrot.slane %v2382_v19, 2 }
 0xbd8   : > { %v2378_v11 = vrot.slane %v2377_v15, 1  ;;  %v2384_v6 = vadd.f32 %v2383_v23, %v2382_v19 }
 0xbda   : > { %v2379_v18 = vadd.f32 %v2378_v11, %v2377_v15  ;;  %v2385_v32 = vrot.slane %v2384_v6, 1 }
 0xbdc   : > { %v2415_v5 = vmul.f32 %v3271_v26, %v2379_v18  ;;  %v2386_v36 = vadd.f32 %v2385_v32, %v2384_v6 }
 0xbde   : > { %v2424_v33 = vsub.f32 %v2415_v5, %v2867_v30  ;;  %v2416_v38 = vmul.f32 %v2412_v35, %v2386_v36 }
 0xbe0   : > { %v2435_v37 = vmul.f32 %v2433_v31, %v2424_v33  ;;  %v2425_v28 = vsub.f32 %v2416_v38, %v2867_v30 }
 0xbe2   : > { %v2444_v25 = vmul.f32 %v2868_v34, %v2435_v37  ;;  %v2436_v39 = vmul.f32 %v2433_v31, %v2425_v28 }
 0xbe4   : > { %v2453_v40 = vadd.f32 %v2869_v27, %v2444_v25  ;;  %v2445_v53 = vmul.f32 %v2868_v34, %v2436_v39 }
 0xbe6   : > { %v2454_v41 = vadd.f32 %v2869_v27, %v2445_v53  ;;  %v2455_v42 = vmax.f32 %v2453_v40, 0.0 }
 0xbe8   : > { %v2456_v43 = vmax.f32 %v2454_v41, 0.0  ;;  %v2457_v44 = vpack.c.bf16 %v2455_v42, %v2455_v42 }
 0xbea   : > { %v2458_v45 = vpack.c.bf16 %v2456_v43, %v2456_v43  ;;  %v2472_v47 = vunpack.c.l.b16 %v2457_v44 }
 0xbec   : > { %v2473_v46 = vunpack.c.l.b16 %v2458_v45 }
 0xbee   : > { %v2474_v49 = vrot.slane %v2473_v46, 7 }
 0xbf0   : > { %v2476_v52 = vsel %vm2475_vm10, %v2474_v49, %v2472_v47 }
 0xbf1   : > { %v2477_v54 = vpack.c.b16 %v2476_v52, %v2476_v52 }
 0xbf3   : > { %3074 = vmatmul.mubr.msk.bf16.vlgmr.msra.gmra.mrb[0].mxu0 %vm1031_vm2, %v2477_v54 }
 0xcc6   : > { %v2527_v56 = vpop.f32.mrb[0].mxu0 }
 0xcc7   : > { %v2528_v57 = vadd.f32 %v2870_v55, %v2527_v56  ;;  %v3075_v59 = vpop.f32.mrb[1].mxu0 }
 0xcc8   : > { %v2530_v60 = vpop.f32.mrb[2].mxu0 }
 0xcc9   : > { %2533 = vst [vmem:[#allocation16] sm:$0x3] %v2528_v57  ;;  %v3076_v61 = vpop.f32.mrb[3].mxu0 }
 0xcca PF: > { %p3142_p0 = scmp.eq.s32.totalorder %s3820_s3, 1  ;;  %s3685_s19 = smov [#allocation16]  }
 0xccb   : > { %s2543_s15 = sshll.u32 %s3685_s19, 4  ;;  %s2544_s15 = int_to_ptr.vmem [resolvable:$true] %s2543_s15 }
 0xccc   : > { %s3568_s24 = scalar_lea.vmem %s2544_s15, 32  ;;  %p3575_p8 = scmp.lt.s32.totalorder %s2544_s15, %s2544_s15 }
 0xccd   : > { %p3569_p5 = scmp.ne.s32.totalorder %s2544_s15, %s3568_s24  ;;  %p3576_p3 = scmp.lt.s32.totalorder %s3568_s24, %s3568_s24 }
 0xccf   : > { %p3570_p2 = pnand %p3569_p5, %p3142_p0  ;;  %p3577_p10 = por %p3576_p3, %p3575_p8 }
 0xcd1   : > { %p3571_p1 = pneg %p3570_p2 }
 0xcd3   : > { %p3578_p13 = pnand %p3577_p10, %p3571_p1 }
 0xcd5   : > { %3581 = shalt.err (!%p3578_p13)
}
 0xcd6   : > { %s4615_s7 = sld [smem:[#allocation43_spill]] }
 0xcdc   : > { %s3582_s21 = scalar_lea.hbm %s4615_s7, 32 }
 0xcdd   : > { %p3583_p6 = scmp.ne.s32.totalorder %s4615_s7, %s3582_s21  ;;  %p3588_p7 = scmp.lt.u32.totalorder %s3582_s21, %s4615_s7 }
 0xcdf   : > { %p3584_p4 = pnand %p3583_p6, %p3142_p0 }
 0xce1   : > { %p3585_p12 = pneg %p3584_p4 }
 0xce3   : > { %p3590_p9 = pnand %p3588_p7, %p3585_p12 }
 0xce5   : > { %3593 = shalt.err (!%p3590_p9)
}
 0xce6   : > { %3102 = dma.vmem_to_hbm [thread:$0]  (%p3142_p0), %s2544_s15, 32, %s4615_s7, [#allocation5]  }
 0xce7   : > { %3631 = dma.done.wait (%p3142_p0), [#allocation5], 32  }
 0xce8   : > { %3633 = vsyncadd (%p3142_p0), [#allocation5], 4294967264 }
 0xce9 PF: > { %s4616_s23 = sld [smem:[#allocation24_spill]]  ;;  %s4617_s17 = sld [smem:[#allocation21_spill]] }
 0xcea   : > { %s4619_s24 = sld [smem:[#allocation23_spill]]  ;;  %s4620_s2 = sld [smem:[#allocation25_spill]] }
 0xceb   : > { %s4621_s1 = smov %s3640_s22 }
 0xcef   : > { %s33_s25 = sadd.s32 1, %s4616_s23   ;;  %s4618_s23 = sld [smem:[#allocation26_spill]] }
 0xcf0   : > { %p30_p11 = scmp.ge.s32.totalorder %s33_s25, 4   ;;  %s4622_s22 = smov %s4617_s17 }
 0xcf2   :  { %32 = sbr.rel (!%p30_p11) target bundleno = 23 (0x17), region = 244 }
 0xcf9   :  { %2556 = vsyncpa [#allocation4], 1 }
 0xcfa   :  { %2558 = vsyncpa [#allocation4 + $0x1], 1 }
 0xcfb   :  { %2559 = vsyncpa [#allocation7], 1 }
 0xcfc   :  { %2560 = vsyncpa [#allocation5], 1 }
 0xcfd   :  { %2562 = vsyncpa [#allocation5 + $0x1], 1 }

</bundles_post_ra>
